<compile_context>
chip_gen: v7x
topology: tpu7x:2x2x1
jax: 0.10.0
libtpu: 0.0.40
codegen_flags: <defaults>
</compile_context>

<pallas_src>
import numpy as np
import jax
import jax.numpy as jnp
from jax.experimental import pallas as pl
from jax.experimental.pallas import tpu as pltpu

IN_CHANNELS = 33
BATCH = 2
EPS1 = float(IN_CHANNELS - 1)   # nn.BatchNorm1d(16, in_channels - 1) -> eps = 32
EPS2 = 16.0                     # nn.BatchNorm1d(32, 16)              -> eps = 16
NEG_SLOPE = 0.01                # nn.LeakyReLU default


def _stack2(a, b):
    # Stack two (1, C) rows into (2, C) using iota + where (avoids sublane concat,
    # keeps the Mosaic lowering trivially simple).
    rows = jax.lax.broadcasted_iota(jnp.int32, (2, a.shape[1]), 0)
    return jnp.where(rows == 0, a, b)


# ----------------------------- Pallas kernel --------------------------------
def _ctnet_kernel(x_ref, w1_ref, cb1_ref, g1s_ref, g1t_ref,
                  w2_ref, cb2_ref, g2s_ref, g2t_ref,
                  w3_ref, b3_ref, out_ref):
    f32 = jnp.float32
    bf16 = jnp.bfloat16

    # fc1 + conv1 fused into one Toeplitz matmul (bf16 weights, f32 accumulate).
    # Output columns are [parity, ch, pos//2] so MaxPool1d(2) is an elementwise max
    # of two lane-aligned 512-wide halves (no XLU shuffles).
    a = jnp.dot(x_ref[...].astype(bf16), w1_ref[...],
                preferred_element_type=f32) + cb1_ref[...]            # (N, 1024)
    p = jnp.maximum(a[:, :512], a[:, 512:])                           # (N, 512) col = ch*32+pos

    # BatchNorm1d(16, eps=32), training-mode batch statistics.  Two MXU launches:
    # [sum(p); sum(p^2)] @ G1s -> per-channel [mean | E[x^2]] (1/count folded into G1s),
    # then [scale; shift] @ G1t -> per-column broadcast.  Static gamma/beta are folded
    # into the fused fc2/conv2 weight host-side.
    st = jnp.dot(_stack2(jnp.sum(p, axis=0, keepdims=True),
                         jnp.sum(p * p, axis=0, keepdims=True)).astype(bf16),
                 g1s_ref[...], preferred_element_type=f32)            # (2, 16)
    mu = st[0:1, :]
    inv = jax.lax.rsqrt(st[1:2, :] - mu * mu + EPS1)
    ab = jnp.dot(_stack2(inv, -mu * inv).astype(bf16), g1t_ref[...],
                 preferred_element_type=f32)                          # (2, 512)
    pn = p * ab[0:1, :] + ab[1:2, :]

    # (bn1 affine . per-channel fc2) pre-multiplied into the conv2 Toeplitz matrix,
    # so fc2 + conv2 is a single matmul and the block-diagonal never hits HBM.
    c2 = jnp.dot(pn.astype(bf16), w2_ref[...],
                 preferred_element_type=f32) + cb2_ref[...]           # (N, 1024)
    q = jnp.maximum(c2[:, :512], c2[:, 512:])                         # (N, 512) == Flatten order

    # BatchNorm1d(32, eps=16), same 2-launch scheme.
    st2 = jnp.dot(_stack2(jnp.sum(q, axis=0, keepdims=True),
                          jnp.sum(q * q, axis=0, keepdims=True)).astype(bf16),
                  g2s_ref[...], preferred_element_type=f32)           # (2, 32)
    mu2 = st2[0:1, :]
    inv2 = jax.lax.rsqrt(st2[1:2, :] - mu2 * mu2 + EPS2)
    ab2 = jnp.dot(_stack2(inv2, -mu2 * inv2).astype(bf16), g2t_ref[...],
                  preferred_element_type=f32)                         # (2, 512)
    qn = q * ab2[0:1, :] + ab2[1:2, :]

    # fc3 (bn2 affine folded in) + LeakyReLU + Softmax(dim=1).
    z = jnp.dot(qn.astype(bf16), w3_ref[...],
                preferred_element_type=f32) + b3_ref[...]             # (N, 2)
    z = jnp.where(z > 0, z, NEG_SLOPE * z)
    e = jnp.exp(z - jnp.max(z, axis=1, keepdims=True))
    out_ref[...] = e / jnp.sum(e, axis=1, keepdims=True)


def ctnet_plus_pallas(x, operands):
    # Grid-less single invocation: ~1.2 MiB of operands fits VMEM with huge margin on
    # v5e/v6e/v7x, so tiling would only add per-step overhead (per review).
    # TODO(synk): if batch grows beyond a handful of rows, add a batch grid with
    # constant weight index_maps and dimension_semantics=("parallel",) so v7x's second
    # TensorCore is used; moot at BATCH=2.
    n_in = 1 + len(operands)
    return pl.pallas_call(
        _ctnet_kernel,
        out_shape=jax.ShapeDtypeStruct((x.shape[0], 2), jnp.float32),
        in_specs=[pl.BlockSpec(memory_space=pltpu.MemorySpace.VMEM)] * n_in,
        out_specs=pl.BlockSpec(memory_space=pltpu.MemorySpace.VMEM),
    )(x, *operands)


# ------------------------ host-side parameter setup (glue) ------------------
def init_params(key):
    ks = jax.random.split(key, 14)

    def w(k, shape, scale=0.1):
        return scale * jax.random.normal(k, shape, dtype=jnp.float32)

    return dict(
        fc1_w=w(ks[0], (66, 33)), fc1_b=w(ks[1], (66,)),
        conv1_w=w(ks[2], (16, 1, 3)), conv1_b=w(ks[3], (16,)),
        bn1_g=1.0 + w(ks[4], (16,)), bn1_b=w(ks[5], (16,)),
        fc2_w=w(ks[6], (32, 32)), fc2_b=w(ks[7], (32,)),
        conv2_w=w(ks[8], (32, 16, 3)), conv2_b=w(ks[9], (32,)),
        bn2_g=1.0 + w(ks[10], (32,)), bn2_b=w(ks[11], (32,)),
        fc3_w=w(ks[12], (2, 512)), fc3_b=w(ks[13], (2,)),
    )


def _bf16(a):
    return jnp.asarray(np.asarray(a, np.float32)).astype(jnp.bfloat16)


def _f32(a):
    return jnp.asarray(np.asarray(a, np.float32))


def build_kernel_operands(p, batch):
    """Pre-fuses static linear layers and affine constants (all in float64)."""
    f64 = np.float64
    fc1_w = np.asarray(p['fc1_w'], f64); fc1_b = np.asarray(p['fc1_b'], f64)
    conv1_w = np.asarray(p['conv1_w'], f64); conv1_b = np.asarray(p['conv1_b'], f64)
    bn1_g = np.asarray(p['bn1_g'], f64); bn1_b = np.asarray(p['bn1_b'], f64)
    fc2_w = np.asarray(p['fc2_w'], f64); fc2_b = np.asarray(p['fc2_b'], f64)
    conv2_w = np.asarray(p['conv2_w'], f64); conv2_b = np.asarray(p['conv2_b'], f64)
    bn2_g = np.asarray(p['bn2_g'], f64); bn2_b = np.asarray(p['bn2_b'], f64)
    fc3_w = np.asarray(p['fc3_w'], f64); fc3_b = np.asarray(p['fc3_b'], f64)

    # conv1 -> Toeplitz (66 -> 1024): output col = parity*512 + ch*32 + (t//2), t = 2*(t//2)+parity
    M1 = np.zeros((66, 1024), f64); cb1c = np.zeros(1024, f64)
    for o in range(16):
        for t in range(64):
            col = (t % 2) * 512 + o * 32 + (t // 2)
            cb1c[col] = conv1_b[o]
            for k in range(3):
                M1[t + k, col] = conv1_w[o, 0, k]
    # fuse fc1 into conv1:  x @ (fc1_w^T @ M1) + (fc1_b @ M1 + conv1 bias)
    w1m1 = fc1_w.T @ M1                       # (33, 1024)
    cb1 = (fc1_b @ M1 + cb1c)[None, :]        # (1, 1024)

    # BN1 statistics matrices (1/count pre-folded -> operands depend on batch size,
    # as expected for training-mode batch statistics).
    cnt1 = batch * 32
    G1s = np.zeros((512, 16), f64); G1t = np.zeros((16, 512), f64)
    for o in range(16):
        G1s[o * 32:(o + 1) * 32, o] = 1.0 / cnt1
        G1t[o, o * 32:(o + 1) * 32] = 1.0

    # fc2 (Linear(32,32) per channel) with bn1 gamma/beta folded in, as block-diagonal.
    BD = np.zeros((512, 512), f64); r2 = np.zeros(512, f64)
    for o in range(16):
        BD[o * 32:(o + 1) * 32, o * 32:(o + 1) * 32] = bn1_g[o] * fc2_w.T
        r2[o * 32:(o + 1) * 32] = bn1_b[o] * fc2_w.sum(axis=1) + fc2_b

    # conv2 (padding=1) -> Toeplitz (512 -> 1024): col = parity*512 + ch*16 + (t//2)
    M2 = np.zeros((512, 1024), f64); cb2c = np.zeros(1024, f64)
    for o in range(32):
        for t in range(32):
            col = (t % 2) * 512 + o * 16 + (t // 2)
            cb2c[col] = conv2_b[o]
            for c in range(16):
                for k in range(3):
                    ip = t + k - 1
                    if 0 <= ip < 32:
                        M2[c * 32 + ip, col] = conv2_w[o, c, k]
    # fuse (bn1-affine . fc2) into conv2: the 512x512 block-diagonal never reaches HBM.
    w2m2 = BD @ M2                            # (512, 1024)
    cb2 = (r2 @ M2 + cb2c)[None, :]           # (1, 1024)

    # BN2 statistics matrices.
    cnt2 = batch * 16
    G2s = np.zeros((512, 32), f64); G2t = np.zeros((32, 512), f64)
    for o in range(32):
        G2s[o * 16:(o + 1) * 16, o] = 1.0 / cnt2
        G2t[o, o * 16:(o + 1) * 16] = 1.0

    # fc3 with bn2 gamma/beta folded in.
    g2rep = np.repeat(bn2_g, 16); b2rep = np.repeat(bn2_b, 16)
    w3f = g2rep[:, None] * fc3_w.T            # (512, 2)
    b3f = (fc3_b + b2rep @ fc3_w.T)[None, :]  # (1, 2)

    # Big weights in bf16 (single-pass MXU, f32 accumulate); G matrices are exactly
    # representable in bf16 (0, 1, 1/32, 1/64); biases stay f32.
    return [_bf16(w1m1), _f32(cb1), _bf16(G1s), _bf16(G1t),
            _bf16(w2m2), _f32(cb2), _bf16(G2s), _bf16(G2t),
            _bf16(w3f), _f32(b3f)]


# ------------------------- pure-JAX reference (for checking) ----------------
def reference_forward(x, p):
    # Reference runs at HIGHEST matmul precision so it approximates exact f32 math;
    # the kernel intentionally uses bf16 weights + single-pass MXU.
    HI = jax.lax.Precision.HIGHEST
    n = x.shape[0]
    h = x.reshape(n, 1, IN_CHANNELS).astype(jnp.float32)
    h = jnp.einsum('ncl,ml->ncm', h, p['fc1_w'], precision=HI) + p['fc1_b'][None, None, :]
    c1 = p['conv1_b'][None, :, None] + sum(
        jnp.einsum('ncl,oc->nol', h[:, :, k:k + 64], p['conv1_w'][:, :, k], precision=HI)
        for k in range(3))
    m1 = jnp.max(c1.reshape(n, 16, 32, 2), axis=-1)
    mu = jnp.mean(m1, axis=(0, 2), keepdims=True)
    var = jnp.mean((m1 - mu) ** 2, axis=(0, 2), keepdims=True)
    b1 = (m1 - mu) / jnp.sqrt(var + EPS1) * p['bn1_g'][None, :, None] + p['bn1_b'][None, :, None]
    f2 = jnp.einsum('ncl,ml->ncm', b1, p['fc2_w'], precision=HI) + p['fc2_b'][None, None, :]
    fp = jnp.pad(f2, ((0, 0), (0, 0), (1, 1)))
    c2 = p['conv2_b'][None, :, None] + sum(
        jnp.einsum('ncl,oc->nol', fp[:, :, k:k + 32], p['conv2_w'][:, :, k], precision=HI)
        for k in range(3))
    m2 = jnp.max(c2.reshape(n, 32, 16, 2), axis=-1)
    mu2 = jnp.mean(m2, axis=(0, 2), keepdims=True)
    var2 = jnp.mean((m2 - mu2) ** 2, axis=(0, 2), keepdims=True)
    b2 = (m2 - mu2) / jnp.sqrt(var2 + EPS2) * p['bn2_g'][None, :, None] + p['bn2_b'][None, :, None]
    z = jnp.dot(b2.reshape(n, 512), p['fc3_w'].T, precision=HI) + p['fc3_b'][None, :]
    z = jnp.where(z > 0, z, NEG_SLOPE * z)
    return jax.nn.softmax(z, axis=1)


if __name__ == "__main__":
    key = jax.random.PRNGKey(0)
    pkey, xkey = jax.random.split(key)
    params = init_params(pkey)
    x = jax.random.normal(xkey, (BATCH, IN_CHANNELS), dtype=jnp.float32)

    operands = build_kernel_operands(params, BATCH)
    out = ctnet_plus_pallas(x, operands)
    out = jax.block_until_ready(out)

    ref = reference_forward(x, params)
    # Tolerance covers bf16 weight storage + single-pass MXU vs the f32 reference
    # (estimated worst-case output error is a few 1e-4 for softmax probabilities).
    np.testing.assert_allclose(np.asarray(out), np.asarray(ref), rtol=2e-3, atol=2e-3)
    assert out.shape == (BATCH, 2)
    # TODO(synk): BatchNorm running-statistics update (a training-time side effect)
    # is not materialized; only the forward output (which uses batch stats) is produced.
    print("KERNEL_OK")
</pallas_src>

<mosaic_0001>
module attributes {stable_mosaic.version = 11 : i64} {
  func.func @_ctnet_kernel(%arg0: memref<2x33xf32, #tpu.memory_space<vmem>>, %arg1: memref<33x1024xbf16, #tpu.memory_space<vmem>>, %arg2: memref<1x1024xf32, #tpu.memory_space<vmem>>, %arg3: memref<512x16xbf16, #tpu.memory_space<vmem>>, %arg4: memref<16x512xbf16, #tpu.memory_space<vmem>>, %arg5: memref<512x1024xbf16, #tpu.memory_space<vmem>>, %arg6: memref<1x1024xf32, #tpu.memory_space<vmem>>, %arg7: memref<512x32xbf16, #tpu.memory_space<vmem>>, %arg8: memref<32x512xbf16, #tpu.memory_space<vmem>>, %arg9: memref<512x2xbf16, #tpu.memory_space<vmem>>, %arg10: memref<1x2xf32, #tpu.memory_space<vmem>>, %arg11: memref<2x2xf32, #tpu.memory_space<vmem>>) attributes {dimension_semantics = [], scalar_prefetch = 0 : i64, scratch_operands = 0 : i64, tpu.core_type = #tpu.core_type<tc>} {
    %c0 = arith.constant 0 : index
    %c0_0 = arith.constant 0 : index
    %0 = vector.load %arg0[%c0, %c0_0] : memref<2x33xf32, #tpu.memory_space<vmem>>, vector<2x33xf32>
    %1 = arith.truncf %0 : vector<2x33xf32> to vector<2x33xbf16>
    %c0_1 = arith.constant 0 : index
    %c0_2 = arith.constant 0 : index
    %2 = vector.load %arg1[%c0_1, %c0_2] : memref<33x1024xbf16, #tpu.memory_space<vmem>>, vector<33x1024xbf16>
    %cst = arith.constant dense<0.000000e+00> : vector<2x1024xf32>
    %3 = tpu.matmul %1, %2, %cst {dimension_numbers = #tpu.dot_dimension_numbers<[1], [0], [0], [1], [0, 0, 1, 1], [], []>} : vector<2x33xbf16>, vector<33x1024xbf16>, vector<2x1024xf32> -> vector<2x1024xf32>
    %c0_3 = arith.constant 0 : index
    %c0_4 = arith.constant 0 : index
    %4 = vector.load %arg2[%c0_3, %c0_4] : memref<1x1024xf32, #tpu.memory_space<vmem>>, vector<1x1024xf32>
    %5 = vector.broadcast %4 : vector<1x1024xf32> to vector<2x1024xf32>
    %6 = arith.addf %3, %5 : vector<2x1024xf32>
    %7 = vector.extract_strided_slice %6 {offsets = [0, 0], sizes = [2, 512], strides = [1, 1]} : vector<2x1024xf32> to vector<2x512xf32>
    %8 = vector.extract_strided_slice %6 {offsets = [0, 512], sizes = [2, 512], strides = [1, 1]} : vector<2x1024xf32> to vector<2x512xf32>
    %9 = arith.maximumf %7, %8 : vector<2x512xf32>
    %cst_5 = arith.constant dense<0.000000e+00> : vector<512xf32>
    %10 = vector.multi_reduction <add>, %9, %cst_5 [0] : vector<2x512xf32> to vector<512xf32>
    %11 = vector.shape_cast %10 : vector<512xf32> to vector<1x512xf32>
    %12 = arith.mulf %9, %9 : vector<2x512xf32>
    %cst_6 = arith.constant dense<0.000000e+00> : vector<512xf32>
    %13 = vector.multi_reduction <add>, %12, %cst_6 [0] : vector<2x512xf32> to vector<512xf32>
    %14 = vector.shape_cast %13 : vector<512xf32> to vector<1x512xf32>
    %15 = tpu.iota {dimensions = array<i32: 0>} : vector<2x512xi32>
    %c0_i32 = arith.constant 0 : i32
    %16 = vector.broadcast %c0_i32 : i32 to vector<2x512xi32>
    %17 = arith.cmpi eq, %15, %16 : vector<2x512xi32>
    %18 = vector.shape_cast %11 : vector<1x512xf32> to vector<1x512xf32>
    %19 = vector.broadcast %18 : vector<1x512xf32> to vector<2x512xf32>
    %20 = vector.shape_cast %14 : vector<1x512xf32> to vector<1x512xf32>
    %21 = vector.broadcast %20 : vector<1x512xf32> to vector<2x512xf32>
    %22 = arith.select %17, %19, %21 : vector<2x512xi1>, vector<2x512xf32>
    %23 = arith.truncf %22 : vector<2x512xf32> to vector<2x512xbf16>
    %c0_7 = arith.constant 0 : index
    %c0_8 = arith.constant 0 : index
    %24 = vector.load %arg3[%c0_7, %c0_8] : memref<512x16xbf16, #tpu.memory_space<vmem>>, vector<512x16xbf16>
    %cst_9 = arith.constant dense<0.000000e+00> : vector<2x16xf32>
    %25 = tpu.matmul %23, %24, %cst_9 {dimension_numbers = #tpu.dot_dimension_numbers<[1], [0], [0], [1], [0, 0, 1, 1], [], []>} : vector<2x512xbf16>, vector<512x16xbf16>, vector<2x16xf32> -> vector<2x16xf32>
    %26 = vector.extract_strided_slice %25 {offsets = [0, 0], sizes = [1, 16], strides = [1, 1]} : vector<2x16xf32> to vector<1x16xf32>
    %27 = vector.extract_strided_slice %25 {offsets = [1, 0], sizes = [1, 16], strides = [1, 1]} : vector<2x16xf32> to vector<1x16xf32>
    %28 = arith.mulf %26, %26 : vector<1x16xf32>
    %29 = arith.subf %27, %28 : vector<1x16xf32>
    %cst_10 = arith.constant 3.200000e+01 : f32
    %30 = vector.broadcast %cst_10 : f32 to vector<1x16xf32>
    %31 = arith.addf %29, %30 : vector<1x16xf32>
    %32 = math.rsqrt %31 : vector<1x16xf32>
    %cst_11 = arith.constant 0.000000e+00 : f32
    %33 = vector.broadcast %cst_11 : f32 to vector<1x16xf32>
    %34 = arith.subf %33, %26 : vector<1x16xf32>
    %35 = arith.mulf %34, %32 : vector<1x16xf32>
    %36 = tpu.iota {dimensions = array<i32: 0>} : vector<2x16xi32>
    %c0_i32_12 = arith.constant 0 : i32
    %37 = vector.broadcast %c0_i32_12 : i32 to vector<2x16xi32>
    %38 = arith.cmpi eq, %36, %37 : vector<2x16xi32>
    %39 = vector.shape_cast %32 : vector<1x16xf32> to vector<1x16xf32>
    %40 = vector.broadcast %39 : vector<1x16xf32> to vector<2x16xf32>
    %41 = vector.shape_cast %35 : vector<1x16xf32> to vector<1x16xf32>
    %42 = vector.broadcast %41 : vector<1x16xf32> to vector<2x16xf32>
    %43 = arith.select %38, %40, %42 : vector<2x16xi1>, vector<2x16xf32>
    %44 = arith.truncf %43 : vector<2x16xf32> to vector<2x16xbf16>
    %c0_13 = arith.constant 0 : index
    %c0_14 = arith.constant 0 : index
    %45 = vector.load %arg4[%c0_13, %c0_14] : memref<16x512xbf16, #tpu.memory_space<vmem>>, vector<16x512xbf16>
    %cst_15 = arith.constant dense<0.000000e+00> : vector<2x512xf32>
    %46 = tpu.matmul %44, %45, %cst_15 {dimension_numbers = #tpu.dot_dimension_numbers<[1], [0], [0], [1], [0, 0, 1, 1], [], []>} : vector<2x16xbf16>, vector<16x512xbf16>, vector<2x512xf32> -> vector<2x512xf32>
    %47 = vector.extract_strided_slice %46 {offsets = [0, 0], sizes = [1, 512], strides = [1, 1]} : vector<2x512xf32> to vector<1x512xf32>
    %48 = vector.broadcast %47 : vector<1x512xf32> to vector<2x512xf32>
    %49 = arith.mulf %9, %48 : vector<2x512xf32>
    %50 = vector.extract_strided_slice %46 {offsets = [1, 0], sizes = [1, 512], strides = [1, 1]} : vector<2x512xf32> to vector<1x512xf32>
    %51 = vector.broadcast %50 : vector<1x512xf32> to vector<2x512xf32>
    %52 = arith.addf %49, %51 : vector<2x512xf32>
    %53 = arith.truncf %52 : vector<2x512xf32> to vector<2x512xbf16>
    %c0_16 = arith.constant 0 : index
    %c0_17 = arith.constant 0 : index
    %54 = vector.load %arg5[%c0_16, %c0_17] : memref<512x1024xbf16, #tpu.memory_space<vmem>>, vector<512x1024xbf16>
    %cst_18 = arith.constant dense<0.000000e+00> : vector<2x1024xf32>
    %55 = tpu.matmul %53, %54, %cst_18 {dimension_numbers = #tpu.dot_dimension_numbers<[1], [0], [0], [1], [0, 0, 1, 1], [], []>} : vector<2x512xbf16>, vector<512x1024xbf16>, vector<2x1024xf32> -> vector<2x1024xf32>
    %c0_19 = arith.constant 0 : index
    %c0_20 = arith.constant 0 : index
    %56 = vector.load %arg6[%c0_19, %c0_20] : memref<1x1024xf32, #tpu.memory_space<vmem>>, vector<1x1024xf32>
    %57 = vector.broadcast %56 : vector<1x1024xf32> to vector<2x1024xf32>
    %58 = arith.addf %55, %57 : vector<2x1024xf32>
    %59 = vector.extract_strided_slice %58 {offsets = [0, 0], sizes = [2, 512], strides = [1, 1]} : vector<2x1024xf32> to vector<2x512xf32>
    %60 = vector.extract_strided_slice %58 {offsets = [0, 512], sizes = [2, 512], strides = [1, 1]} : vector<2x1024xf32> to vector<2x512xf32>
    %61 = arith.maximumf %59, %60 : vector<2x512xf32>
    %cst_21 = arith.constant dense<0.000000e+00> : vector<512xf32>
    %62 = vector.multi_reduction <add>, %61, %cst_21 [0] : vector<2x512xf32> to vector<512xf32>
    %63 = vector.shape_cast %62 : vector<512xf32> to vector<1x512xf32>
    %64 = arith.mulf %61, %61 : vector<2x512xf32>
    %cst_22 = arith.constant dense<0.000000e+00> : vector<512xf32>
    %65 = vector.multi_reduction <add>, %64, %cst_22 [0] : vector<2x512xf32> to vector<512xf32>
    %66 = vector.shape_cast %65 : vector<512xf32> to vector<1x512xf32>
    %67 = tpu.iota {dimensions = array<i32: 0>} : vector<2x512xi32>
    %c0_i32_23 = arith.constant 0 : i32
    %68 = vector.broadcast %c0_i32_23 : i32 to vector<2x512xi32>
    %69 = arith.cmpi eq, %67, %68 : vector<2x512xi32>
    %70 = vector.shape_cast %63 : vector<1x512xf32> to vector<1x512xf32>
    %71 = vector.broadcast %70 : vector<1x512xf32> to vector<2x512xf32>
    %72 = vector.shape_cast %66 : vector<1x512xf32> to vector<1x512xf32>
    %73 = vector.broadcast %72 : vector<1x512xf32> to vector<2x512xf32>
    %74 = arith.select %69, %71, %73 : vector<2x512xi1>, vector<2x512xf32>
    %75 = arith.truncf %74 : vector<2x512xf32> to vector<2x512xbf16>
    %c0_24 = arith.constant 0 : index
    %c0_25 = arith.constant 0 : index
    %76 = vector.load %arg7[%c0_24, %c0_25] : memref<512x32xbf16, #tpu.memory_space<vmem>>, vector<512x32xbf16>
    %cst_26 = arith.constant dense<0.000000e+00> : vector<2x32xf32>
    %77 = tpu.matmul %75, %76, %cst_26 {dimension_numbers = #tpu.dot_dimension_numbers<[1], [0], [0], [1], [0, 0, 1, 1], [], []>} : vector<2x512xbf16>, vector<512x32xbf16>, vector<2x32xf32> -> vector<2x32xf32>
    %78 = vector.extract_strided_slice %77 {offsets = [0, 0], sizes = [1, 32], strides = [1, 1]} : vector<2x32xf32> to vector<1x32xf32>
    %79 = vector.extract_strided_slice %77 {offsets = [1, 0], sizes = [1, 32], strides = [1, 1]} : vector<2x32xf32> to vector<1x32xf32>
    %80 = arith.mulf %78, %78 : vector<1x32xf32>
    %81 = arith.subf %79, %80 : vector<1x32xf32>
    %cst_27 = arith.constant 1.600000e+01 : f32
    %82 = vector.broadcast %cst_27 : f32 to vector<1x32xf32>
    %83 = arith.addf %81, %82 : vector<1x32xf32>
    %84 = math.rsqrt %83 : vector<1x32xf32>
    %cst_28 = arith.constant 0.000000e+00 : f32
    %85 = vector.broadcast %cst_28 : f32 to vector<1x32xf32>
    %86 = arith.subf %85, %78 : vector<1x32xf32>
    %87 = arith.mulf %86, %84 : vector<1x32xf32>
    %88 = tpu.iota {dimensions = array<i32: 0>} : vector<2x32xi32>
    %c0_i32_29 = arith.constant 0 : i32
    %89 = vector.broadcast %c0_i32_29 : i32 to vector<2x32xi32>
    %90 = arith.cmpi eq, %88, %89 : vector<2x32xi32>
    %91 = vector.shape_cast %84 : vector<1x32xf32> to vector<1x32xf32>
    %92 = vector.broadcast %91 : vector<1x32xf32> to vector<2x32xf32>
    %93 = vector.shape_cast %87 : vector<1x32xf32> to vector<1x32xf32>
    %94 = vector.broadcast %93 : vector<1x32xf32> to vector<2x32xf32>
    %95 = arith.select %90, %92, %94 : vector<2x32xi1>, vector<2x32xf32>
    %96 = arith.truncf %95 : vector<2x32xf32> to vector<2x32xbf16>
    %c0_30 = arith.constant 0 : index
    %c0_31 = arith.constant 0 : index
    %97 = vector.load %arg8[%c0_30, %c0_31] : memref<32x512xbf16, #tpu.memory_space<vmem>>, vector<32x512xbf16>
    %cst_32 = arith.constant dense<0.000000e+00> : vector<2x512xf32>
    %98 = tpu.matmul %96, %97, %cst_32 {dimension_numbers = #tpu.dot_dimension_numbers<[1], [0], [0], [1], [0, 0, 1, 1], [], []>} : vector<2x32xbf16>, vector<32x512xbf16>, vector<2x512xf32> -> vector<2x512xf32>
    %99 = vector.extract_strided_slice %98 {offsets = [0, 0], sizes = [1, 512], strides = [1, 1]} : vector<2x512xf32> to vector<1x512xf32>
    %100 = vector.broadcast %99 : vector<1x512xf32> to vector<2x512xf32>
    %101 = arith.mulf %61, %100 : vector<2x512xf32>
    %102 = vector.extract_strided_slice %98 {offsets = [1, 0], sizes = [1, 512], strides = [1, 1]} : vector<2x512xf32> to vector<1x512xf32>
    %103 = vector.broadcast %102 : vector<1x512xf32> to vector<2x512xf32>
    %104 = arith.addf %101, %103 : vector<2x512xf32>
    %105 = arith.truncf %104 : vector<2x512xf32> to vector<2x512xbf16>
    %c0_33 = arith.constant 0 : index
    %c0_34 = arith.constant 0 : index
    %106 = vector.load %arg9[%c0_33, %c0_34] : memref<512x2xbf16, #tpu.memory_space<vmem>>, vector<512x2xbf16>
    %cst_35 = arith.constant dense<0.000000e+00> : vector<2x2xf32>
    %107 = tpu.matmul %105, %106, %cst_35 {dimension_numbers = #tpu.dot_dimension_numbers<[1], [0], [0], [1], [0, 0, 1, 1], [], []>} : vector<2x512xbf16>, vector<512x2xbf16>, vector<2x2xf32> -> vector<2x2xf32>
    %c0_36 = arith.constant 0 : index
    %c0_37 = arith.constant 0 : index
    %108 = vector.load %arg10[%c0_36, %c0_37] : memref<1x2xf32, #tpu.memory_space<vmem>>, vector<1x2xf32>
    %109 = vector.broadcast %108 : vector<1x2xf32> to vector<2x2xf32>
    %110 = arith.addf %107, %109 : vector<2x2xf32>
    %cst_38 = arith.constant 0.000000e+00 : f32
    %111 = vector.broadcast %cst_38 : f32 to vector<2x2xf32>
    %112 = arith.cmpf ogt, %110, %111 : vector<2x2xf32>
    %cst_39 = arith.constant 0.00999999977 : f32
    %113 = vector.broadcast %cst_39 : f32 to vector<2x2xf32>
    %114 = arith.mulf %113, %110 : vector<2x2xf32>
    %115 = arith.select %112, %110, %114 : vector<2x2xi1>, vector<2x2xf32>
    %cst_40 = arith.constant dense<0xFF800000> : vector<2xf32>
    %116 = vector.multi_reduction <maximumf>, %115, %cst_40 [1] : vector<2x2xf32> to vector<2xf32>
    %117 = vector.shape_cast %116 : vector<2xf32> to vector<2x1xf32>
    %118 = vector.broadcast %117 : vector<2x1xf32> to vector<2x2xf32>
    %119 = arith.subf %115, %118 : vector<2x2xf32>
    %120 = math.exp %119 : vector<2x2xf32>
    %cst_41 = arith.constant dense<0.000000e+00> : vector<2xf32>
    %121 = vector.multi_reduction <add>, %120, %cst_41 [1] : vector<2x2xf32> to vector<2xf32>
    %122 = vector.shape_cast %121 : vector<2xf32> to vector<2x1xf32>
    %123 = vector.broadcast %122 : vector<2x1xf32> to vector<2x2xf32>
    %124 = arith.divf %120, %123 : vector<2x2xf32>
    %c0_42 = arith.constant 0 : index
    %c0_43 = arith.constant 0 : index
    %125 = vector.load %arg11[%c0_42, %c0_43] : memref<2x2xf32, #tpu.memory_space<vmem>>, vector<2x2xf32>
    tpu.vector_store %arg11[%c0_42, %c0_43], %124 {strides = array<i32>} : memref<2x2xf32, #tpu.memory_space<vmem>>, vector<2x2xf32>,
    return
  }
}

</mosaic_0001>

<bundles_post_ra>
// kernel: tpu_custom_call.1
= control target key start
LH: loop header
LB: loop body
LE: loop exit
PB: predicated region body
PF: predicated region fallthrough
CT: control target
= control target key end

     0   :  { %16 = vsyncpa [#allocation3], 0  ;;  %s5323_s0 = inlined_call_operand.vmem [shape: f32[2,33], index: 0, kind: input, shape index: {}]   ;;  %s5324_s1 = inlined_call_operand.vmem [shape: bf16[33,1024], index: 1, kind: input, shape index: {}]   ;;  %s5325_s2 = inlined_call_operand.vmem [shape: f32[1,1024], index: 2, kind: input, shape index: {}]   ;;  %s5326_s3 = inlined_call_operand.vmem [shape: bf16[512,16], index: 3, kind: input, shape index: {}]   ;;  %s5327_s4 = inlined_call_operand.vmem [shape: bf16[16,512], index: 4, kind: input, shape index: {}]   ;;  %s5328_s5 = inlined_call_operand.hbm [shape: bf16[512,1024], index: 5, kind: input, shape index: {}]   ;;  %s5329_s6 = inlined_call_operand.vmem [shape: f32[1,1024], index: 6, kind: input, shape index: {}]   ;;  %s5330_s7 = inlined_call_operand.vmem [shape: bf16[512,32], index: 7, kind: input, shape index: {}]   ;;  %s5331_s8 = inlined_call_operand.vmem [shape: bf16[32,512], index: 8, kind: input, shape index: {}]   ;;  %s5332_s9 = inlined_call_operand.vmem [shape: bf16[512,2], index: 9, kind: input, shape index: {}]   ;;  %s5333_s10 = inlined_call_operand.vmem [shape: f32[1,2], index: 10, kind: input, shape index: {}]   ;;  %s5334_s11 = inlined_call_operand.hbm [shape: f32[2,2], index: 11, kind: output, shape index: {}]  }
   0x1   :  { %17 = vsyncpa [#allocation4], 0  ;;  %s4625_s17 = smov [#allocation2]   ;;  %s4577_s21 = scalar_lea.hbm %s5328_s5, 32768 }
   0x2   :  { %s33_s18 = sshll.u32 %s4625_s17, 4  ;;  %p4578_p0 = scmp.ne.s32.totalorder %s5328_s5, %s4577_s21  ;;  %s34_s18 = int_to_ptr.vmem [resolvable:$true] %s33_s18 }
   0x3   :  { %p4581_p1 = scmp.lt.u32.totalorder %s4577_s21, %s5328_s5 }
   0x5   :  { %p4583_p2 = pnand %p4581_p1, %p4578_p0 }
   0x7   :  { %4586 = shalt.err (!%p4583_p2)
}
   0x8   :  { %s4587_s26 = scalar_lea.vmem %s34_s18, 32768  ;;  %p4592_p4 = scmp.lt.s32.totalorder %s34_s18, %s34_s18 }
   0x9   :  { %p4588_p3 = scmp.ne.s32.totalorder %s34_s18, %s4587_s26  ;;  %p4593_p5 = scmp.lt.s32.totalorder %s4587_s26, %s4587_s26 }
   0xb   :  { %p4594_p6 = por %p4593_p5, %p4592_p4 }
   0xd   :  { %p4595_p7 = pnand %p4594_p6, %p4588_p3 }
   0xf   :  { %4598 = shalt.err (!%p4595_p7)
}
  0x10   :  { %s4626_s27 = smov 512   ;;  %s4627_s28 = smov 32  }
  0x11   :  { %39 = dma.hbm_to_vmem [thread:$0]  %s5328_s5, 32768, %s34_s18, [#allocation3], %s4626_s27, %s4626_s27, %s4627_s28  }
  0x12   :  { %4621 = dma.done.wait [#allocation3], 32768  }
  0x13   :  { %4622 = vsyncadd [#allocation3], 4294934528  ;;  %v4628_v0 = vmov 0   ;;  %vm222_vm0 = vcmask 1040384   ;;  %v56_v1 = vld [vmem:[%s5324_s1] sm:$0xff]  ;;  %v57_v3 = vld [vmem:[%s5324_s1 + $0x8] sm:$0xff] }
  0x14   :  { %281 = vmatprep.mubr.bf16.mxu0 %v4628_v0  ;;  %322 = vmatprep.mubr.bf16.mxu1 %v4628_v0  ;;  %v60_v2 = vld [vmem:[%s5324_s1 + $0x20] sm:$0xff]  ;;  %v61_v5 = vld [vmem:[%s5324_s1 + $0x28] sm:$0xff]  ;;  %v4732_v15 = vsel %vm222_vm0, 65535, %v4628_v0  ;;  %v58_v27 = vld [vmem:[%s5324_s1 + $0x10] sm:$0xff]  ;;  %vm218_vm1 = vcmask 269312   ;;  %vm417_vm2 = vcmask 1041408  }
  0x15   :  { %v3890_v4 = vcombine.high %v56_v1, %v60_v2  ;;  %v3889_v6 = vcombine.low %v56_v1, %v60_v2  ;;  %v64_v7 = vld [vmem:[%s5324_s1 + $0x40] sm:$0xff]  ;;  %v3892_v9 = vcombine.high %v57_v3, %v61_v5  ;;  %v3891_v10 = vcombine.low %v57_v3, %v61_v5  ;;  %v65_v12 = vld [vmem:[%s5324_s1 + $0x48] sm:$0xff]  ;;  %v62_v28 = vld [vmem:[%s5324_s1 + $0x30] sm:$0xff] }
  0x16   :  { %v68_v8 = vld [vmem:[%s5324_s1 + $0x60] sm:$0xff]  ;;  %v69_v13 = vld [vmem:[%s5324_s1 + $0x68] sm:$0xff]  ;;  %v59_v29 = vld [vmem:[%s5324_s1 + $0x18] sm:$0xff]  ;;  %v3894_v36 = vcombine.high %v58_v27, %v62_v28  ;;  %v3893_v42 = vcombine.low %v58_v27, %v62_v28  ;;  %vm871_vm4 = vcmask 130048   ;;  %vm3385_vm5 = vcmask 261120  }
  0x17   :  { %v3898_v11 = vcombine.high %v64_v7, %v68_v8  ;;  %v72_v14 = vld [vmem:[%s5324_s1 + $0x80] sm:$0x11]  ;;  %249 = vmatprep.subr.bf16.mxu0 %v3890_v4  ;;  %v3900_v16 = vcombine.high %v65_v12, %v69_v13  ;;  %v73_v18 = vld [vmem:[%s5324_s1 + $0x88] sm:$0x11]  ;;  %290 = vmatprep.subr.bf16.mxu1 %v3892_v9  ;;  %v3897_v19 = vcombine.low %v64_v7, %v68_v8  ;;  %v63_v30 = vld [vmem:[%s5324_s1 + $0x38] sm:$0xff]  ;;  %vm3861_vm7 = vcmask 9216  }
  0x18   :  { %v3906_v17 = vcombine.high %v72_v14, %v72_v14  ;;  %250 = vmatpush1.bf16.msra.mxu0 %v3889_v6  ;;  %v3908_v20 = vcombine.high %v73_v18, %v73_v18  ;;  %v3905_v21 = vcombine.low %v72_v14, %v72_v14  ;;  %291 = vmatpush1.bf16.msra.mxu1 %v3891_v10  ;;  %v54_v26 = vld [vmem:[%s5323_s0] sm:$0x3]  ;;  %v66_v32 = vld [vmem:[%s5324_s1 + $0x50] sm:$0xff]  ;;  %v67_v37 = vld [vmem:[%s5324_s1 + $0x58] sm:$0xff] }
  0x19   :  { %251 = vmatprep.subr.bf16.mxu0 %v3898_v11  ;;  %v3899_v22 = vcombine.low %v65_v12, %v69_v13  ;;  %v3907_v24 = vcombine.low %v73_v18, %v73_v18  ;;  %292 = vmatprep.subr.bf16.mxu1 %v3900_v16  ;;  %v70_v33 = vld [vmem:[%s5324_s1 + $0x70] sm:$0xff]  ;;  %v71_v38 = vld [vmem:[%s5324_s1 + $0x78] sm:$0xff]  ;;  %v3896_v40 = vcombine.high %v59_v29, %v63_v30  ;;  %v4455_v56 = vld [vmem:[%s5326_s3 + $0x40] sm:$0xff]  }
  0x1a   :  { %v229_v23 = vand.u32 %v3906_v17, %v4732_v15  ;;  %v235_v25 = vand.u32 %v3908_v20, %v4732_v15  ;;  %v226_v31 = vand.u32 %v3905_v21, %v4732_v15  ;;  %v74_v34 = vld [vmem:[%s5324_s1 + $0x90] sm:$0x11]  ;;  %v75_v39 = vld [vmem:[%s5324_s1 + $0x98] sm:$0x11]  ;;  %v55_v41 = vpack.c.bf16 %v54_v26, %v54_v26  ;;  %v4456_v57 = vld [vmem:[%s5326_s3 + $0xc0] sm:$0xff]  }
  0x1b   :  { %v232_v35 = vand.u32 %v3907_v24, %v4732_v15  ;;  %v3895_v43 = vcombine.low %v59_v29, %v63_v30  ;;  %v3902_v44 = vcombine.high %v66_v32, %v70_v33  ;;  %v3910_v45 = vcombine.high %v74_v34, %v74_v34  ;;  %v4457_v58 = vld [vmem:[%s5326_s3] sm:$0xff]   ;;  %v4459_v60 = vld [vmem:[%s5326_s3 + $0x48] sm:$0xff]   ;;  %v4463_v1 = vld [vmem:[%s5326_s3 + $0x50] sm:$0xff]  }
  0x1c   :  { %252 = vmatpush1.bf16.msra.mxu0 %v3897_v19  ;;  %293 = vmatpush1.bf16.msra.mxu1 %v3899_v22  ;;  %v3904_v46 = vcombine.high %v67_v37, %v71_v38  ;;  %v3912_v47 = vcombine.high %v75_v39, %v75_v39  ;;  %v3901_v48 = vcombine.low %v66_v32, %v70_v33  ;;  %v4458_v59 = vld [vmem:[%s5326_s3 + $0x80] sm:$0xff]   ;;  %v4460_v61 = vld [vmem:[%s5326_s3 + $0xc8] sm:$0xff]   ;;  %v4464_v2 = vld [vmem:[%s5326_s3 + $0xd0] sm:$0xff]  }
  0x1d   :  { %253 = vmatprep.subr.bf16.mxu0 %v229_v23  ;;  %294 = vmatprep.subr.bf16.mxu1 %v235_v25  ;;  %v3909_v49 = vcombine.low %v74_v34, %v74_v34  ;;  %v3903_v50 = vcombine.low %v67_v37, %v71_v38  ;;  %v241_v51 = vand.u32 %v3910_v45, %v4732_v15  ;;  %v4461_v62 = vld [vmem:[%s5326_s3 + $0x8] sm:$0xff]   ;;  %v4465_v3 = vld [vmem:[%s5326_s3 + $0x10] sm:$0xff]   ;;  %v4467_v5 = vld [vmem:[%s5326_s3 + $0x58] sm:$0xff]   ;;  %v78_v25 = vlaneseq }
  0x1e   :  { %v3911_v52 = vcombine.low %v75_v39, %v75_v39  ;;  %v247_v53 = vand.u32 %v3912_v47, %v4732_v15  ;;  %v4462_v63 = vld [vmem:[%s5326_s3 + $0x88] sm:$0xff]   ;;  %v4466_v4 = vld [vmem:[%s5326_s3 + $0x90] sm:$0xff]   ;;  %v4468_v6 = vld [vmem:[%s5326_s3 + $0xd8] sm:$0xff]  }
  0x1f   :  { %v238_v54 = vand.u32 %v3909_v49, %v4732_v15  ;;  %v4469_v7 = vld [vmem:[%s5326_s3 + $0x18] sm:$0xff]   ;;  %v4471_v9 = vld [vmem:[%s5326_s3 + $0x60] sm:$0xff]   ;;  %v4475_v13 = vld [vmem:[%s5326_s3 + $0x68] sm:$0xff]   ;;  %v4880_v27 = vshrl.u32 %v78_v25, 7 }
  0x20   :  { %254 = vmatpush1.bf16.msra.mxu0 %v226_v31  ;;  %295 = vmatpush1.bf16.msra.mxu1 %v232_v35  ;;  %v244_v55 = vand.u32 %v3911_v52, %v4732_v15  ;;  %v4470_v8 = vld [vmem:[%s5326_s3 + $0x98] sm:$0xff]   ;;  %v4472_v10 = vld [vmem:[%s5326_s3 + $0xe0] sm:$0xff]   ;;  %v4476_v14 = vld [vmem:[%s5326_s3 + $0xe8] sm:$0xff]  }
  0x21   :  { %331 = vmatprep.subr.bf16.mxu0 %v3894_v36  ;;  %372 = vmatprep.subr.bf16.mxu1 %v3896_v40  ;;  %v4473_v11 = vld [vmem:[%s5326_s3 + $0x20] sm:$0xff]   ;;  %v4477_v15 = vld [vmem:[%s5326_s3 + $0x28] sm:$0xff]   ;;  %v4479_v17 = vld [vmem:[%s5326_s3 + $0x70] sm:$0xff]   ;;  %v4883_v35 = vsub.s32 0, %v4880_v27  ;;  %v96_v36 = vsub.s32 4, %v4880_v27  ;;  %v88_v38 = vsub.s32 2, %v4880_v27 }
  0x22   :  { %v4474_v12 = vld [vmem:[%s5326_s3 + $0xa0] sm:$0xff]   ;;  %v4478_v16 = vld [vmem:[%s5326_s3 + $0xa8] sm:$0xff]   ;;  %v4480_v18 = vld [vmem:[%s5326_s3 + $0xf0] sm:$0xff]   ;;  %v4891_v39 = vsub.s32 1, %v4880_v27  ;;  %v104_v40 = vsub.s32 6, %v4880_v27  ;;  %vm480_vm3 = vcmp.eq.s32.totalorder %v4880_v27, 0 }
  0x23   :  { %3913 = vmatmul.mubr.msk.bf16.vlgmr.msra.gmra.mrb[0].mxu0 %vm218_vm1, %v55_v41  ;;  %3914 = vmatmul.mubr.msk.bf16.vlgmr.msra.gmra.mrb[0].mxu1 %vm218_vm1, %v55_v41  ;;  %v4481_v19 = vld [vmem:[%s5326_s3 + $0x30] sm:$0xff]   ;;  %v4483_v21 = vld [vmem:[%s5326_s3 + $0x78] sm:$0xff]   ;;  %v76_v37 = vld [vmem:[%s5325_s2] sm:$0xff] }
  0x24   :  { %332 = vmatpush1.bf16.msra.mxu0 %v3893_v42  ;;  %373 = vmatpush1.bf16.msra.mxu1 %v3895_v43  ;;  %v4482_v20 = vld [vmem:[%s5326_s3 + $0xb0] sm:$0xff]   ;;  %v4484_v22 = vld [vmem:[%s5326_s3 + $0xf8] sm:$0xff]   ;;  %v92_v42 = vsub.s32 3, %v4880_v27  ;;  %v108_v43 = vsub.s32 7, %v4880_v27  ;;  %v97_v45 = vrot.slane %v76_v37, %v96_v36  ;;  %v85_v47 = vrot.slane %v76_v37, %v4891_v39 }
  0x25   :  { %333 = vmatprep.subr.bf16.mxu0 %v3902_v44  ;;  %374 = vmatprep.subr.bf16.mxu1 %v3904_v46  ;;  %v4485_v23 = vld [vmem:[%s5326_s3 + $0x38] sm:$0xff]   ;;  %v81_v44 = vrot.slane %v76_v37, %v4883_v35  ;;  %v89_v46 = vrot.slane %v76_v37, %v88_v38 }
  0x26   :  { %363 = vmatprep.mubr.bf16.mxu0 %v4628_v0  ;;  %404 = vmatprep.mubr.bf16.mxu1 %v4628_v0  ;;  %v4486_v24 = vld [vmem:[%s5326_s3 + $0xb8] sm:$0xff]  }
  0x28   :  { %334 = vmatpush1.bf16.msra.mxu0 %v3901_v48  ;;  %375 = vmatpush1.bf16.msra.mxu1 %v3903_v50  ;;  %v105_v48 = vrot.slane %v76_v37, %v104_v40  ;;  %v93_v50 = vrot.slane %v76_v37, %v92_v42 }
  0x29   :  { %335 = vmatprep.subr.bf16.mxu0 %v241_v51  ;;  %376 = vmatprep.subr.bf16.mxu1 %v247_v53  ;;  %v109_v51 = vrot.slane %v76_v37, %v108_v43 }
  0x2c   :  { %336 = vmatpush1.bf16.msra.mxu0 %v238_v54  ;;  %377 = vmatpush1.bf16.msra.mxu1 %v244_v55 }
  0x2d   :  { %4286 = vmatprep.subr.bf16.mxu0 %v4455_v56  ;;  %4308 = vmatprep.subr.bf16.mxu1 %v4456_v57 }
  0x2f   :  { %3915 = vmatmul.mubr.msk.bf16.vlgmr.msra.gmra.mrb[4].mxu0 %vm218_vm1, %v55_v41  ;;  %3916 = vmatmul.mubr.msk.bf16.vlgmr.msra.gmra.mrb[4].mxu1 %vm218_vm1, %v55_v41  ;;  %v100_v41 = vsub.s32 5, %v4880_v27  ;;  %v4543_v27 = vld [vmem:[%s5332_s9 + $0x8] sm:$0xff]  }
  0x30   :  { %4287 = vmatpush3.bf16.msra.mxu0 %v4457_v58  ;;  %4309 = vmatpush3.bf16.msra.mxu1 %v4458_v59 }
  0x31   :  { %4288 = vmatprep.subr.bf16.mxu0 %v4459_v60  ;;  %4310 = vmatprep.subr.bf16.mxu1 %v4460_v61  ;;  %v101_v49 = vrot.slane %v76_v37, %v100_v41 }
  0x34   :  { %4289 = vmatpush3.bf16.msra.mxu0 %v4461_v62  ;;  %4311 = vmatpush3.bf16.msra.mxu1 %v4462_v63 }
  0x35   :  { %4290 = vmatprep.subr.bf16.mxu0 %v4463_v1  ;;  %4312 = vmatprep.subr.bf16.mxu1 %v4464_v2 }
  0x38   :  { %4291 = vmatpush3.bf16.msra.mxu0 %v4465_v3  ;;  %4313 = vmatpush3.bf16.msra.mxu1 %v4466_v4 }
  0x39   :  { %4292 = vmatprep.subr.bf16.mxu0 %v4467_v5  ;;  %4314 = vmatprep.subr.bf16.mxu1 %v4468_v6 }
  0x3c   :  { %4293 = vmatpush3.bf16.msra.mxu0 %v4469_v7  ;;  %4315 = vmatpush3.bf16.msra.mxu1 %v4470_v8 }
  0x3d   :  { %4294 = vmatprep.subr.bf16.mxu0 %v4471_v9  ;;  %4316 = vmatprep.subr.bf16.mxu1 %v4472_v10 }
  0x40   :  { %4295 = vmatpush3.bf16.msra.mxu0 %v4473_v11  ;;  %4317 = vmatpush3.bf16.msra.mxu1 %v4474_v12 }
  0x41   :  { %4296 = vmatprep.subr.bf16.mxu0 %v4475_v13  ;;  %4318 = vmatprep.subr.bf16.mxu1 %v4476_v14 }
  0x44   :  { %4297 = vmatpush3.bf16.msra.mxu0 %v4477_v15  ;;  %4319 = vmatpush3.bf16.msra.mxu1 %v4478_v16 }
  0x45   :  { %4298 = vmatprep.subr.bf16.mxu0 %v4479_v17  ;;  %4320 = vmatprep.subr.bf16.mxu1 %v4480_v18 }
  0x48   :  { %4299 = vmatpush3.bf16.msra.mxu0 %v4481_v19  ;;  %4321 = vmatpush3.bf16.msra.mxu1 %v4482_v20 }
  0x49   :  { %4300 = vmatprep.subr.bf16.mxu0 %v4483_v21  ;;  %4322 = vmatprep.subr.bf16.mxu1 %v4484_v22 }
  0x4c   :  { %4301 = vmatpush3.bf16.msra.mxu0 %v4485_v23  ;;  %4323 = vmatpush3.bf16.msra.mxu1 %v4486_v24 }
  0xf6   :  { %v283_v26 = vpop.f32.mrb[0].mxu0  ;;  %v324_v28 = vpop.f32.mrb[0].mxu1 }
  0xf7   :  { %v285_v29 = vpop.f32.mrb[1].mxu0  ;;  %v326_v30 = vpop.f32.mrb[1].mxu1  ;;  %v284_v53 = vadd.f32 %v283_v26, %v81_v44  ;;  %v325_v57 = vadd.f32 %v324_v28, %v89_v46 }
  0xf8   :  { %v287_v31 = vpop.f32.mrb[2].mxu0  ;;  %v328_v32 = vpop.f32.mrb[2].mxu1  ;;  %v286_v58 = vadd.f32 %v285_v29, %v85_v47  ;;  %v327_v63 = vadd.f32 %v326_v30, %v93_v50 }
  0xf9   :  { %v288_v33 = vpop.f32.mrb[3].mxu0  ;;  %v329_v34 = vpop.f32.mrb[3].mxu1 }
 0x102   :  { %v365_v52 = vpop.f32.mrb[4].mxu0  ;;  %v406_v55 = vpop.f32.mrb[4].mxu1 }
 0x103   :  { %v366_v54 = vadd.f32 %v365_v52, %v97_v45  ;;  %v367_v56 = vpop.f32.mrb[5].mxu0  ;;  %v407_v59 = vadd.f32 %v406_v55, %v105_v48  ;;  %v408_v61 = vpop.f32.mrb[5].mxu1 }
 0x104   :  { %v368_v60 = vadd.f32 %v367_v56, %v101_v49  ;;  %v369_v62 = vpop.f32.mrb[6].mxu0  ;;  %v409_v2 = vadd.f32 %v408_v61, %v109_v51  ;;  %v410_v3 = vpop.f32.mrb[6].mxu1 }
 0x105   :  { %v4911_v1 = vmax.f32 %v284_v53, %v366_v54  ;;  %v370_v4 = vpop.f32.mrb[7].mxu0  ;;  %v4913_v5 = vmax.f32 %v325_v57, %v407_v59  ;;  %v411_v7 = vpop.f32.mrb[7].mxu1 }
 0x106   :  { %v4915_v6 = vmax.f32 %v286_v58, %v368_v60  ;;  %v4921_v10 = vmax.f32 %v327_v63, %v409_v2 }
 0x107   :  { %v418_v8 = vsel %vm417_vm2, %v4911_v1, 0.0  ;;  %v446_v9 = vmul.f32 %v4911_v1, %v4911_v1  ;;  %v432_v12 = vsel %vm417_vm2, %v4913_v5, 0.0  ;;  %v448_v13 = vmul.f32 %v4913_v5, %v4913_v5 }
 0x108   :  { %v419_v11 = vrot.slane %v418_v8, 4  ;;  %v425_v14 = vsel %vm417_vm2, %v4915_v6, 0.0  ;;  %v433_v16 = vrot.slane %v432_v12, 4  ;;  %v447_v18 = vmul.f32 %v4915_v6, %v4915_v6 }
 0x109   :  { %v450_v15 = vsel %vm417_vm2, %v446_v9, 0.0  ;;  %v426_v17 = vrot.slane %v425_v14, 4  ;;  %v464_v21 = vsel %vm417_vm2, %v448_v13, 0.0  ;;  %v439_v22 = vsel %vm417_vm2, %v4921_v10, 0.0 }
 0x10a   :  { %v420_v19 = vadd.f32 %v419_v11, %v418_v8  ;;  %v451_v20 = vrot.slane %v450_v15, 4  ;;  %v434_v23 = vadd.f32 %v433_v16, %v432_v12  ;;  %v465_v24 = vrot.slane %v464_v21, 4 }
 0x10b   :  { %v427_v25 = vadd.f32 %v426_v17, %v425_v14  ;;  %v457_v26 = vsel %vm417_vm2, %v447_v18, 0.0  ;;  %v440_v31 = vrot.slane %v439_v22, 4  ;;  %v449_v37 = vmul.f32 %v4921_v10, %v4921_v10 }
 0x10c   :  { %v421_v28 = vrot.slane %v420_v19, 2  ;;  %v452_v29 = vadd.f32 %v451_v20, %v450_v15  ;;  %v458_v30 = vrot.slane %v457_v26, 4  ;;  %v435_v32 = vrot.slane %v434_v23, 2 }
 0x10d   :  { %v466_v33 = vadd.f32 %v465_v24, %v464_v21  ;;  %v428_v34 = vrot.slane %v427_v25, 2  ;;  %v441_v47 = vadd.f32 %v440_v31, %v439_v22  ;;  %v471_v50 = vsel %vm417_vm2, %v449_v37, 0.0  ;;  %v4490_v31 = vld [vmem:[%s5327_s4 + $0x8] ss:$16 sps:$4 sm:$0xff]  }
 0x10e   :  { %v422_v44 = vadd.f32 %v421_v28, %v420_v19  ;;  %v453_v45 = vrot.slane %v452_v29, 2  ;;  %v459_v46 = vadd.f32 %v458_v30, %v457_v26  ;;  %v472_v56 = vrot.slane %v471_v50, 4  ;;  %v4489_v28 = vld [vmem:[%s5327_s4 + $0x4] ss:$16 sps:$4 sm:$0xff]   ;;  %v4487_v30 = vld [vmem:[%s5327_s4] ss:$16 sps:$4 sm:$0xff]  }
 0x10f   :  { %v467_v48 = vrot.slane %v466_v33, 2  ;;  %v429_v49 = vadd.f32 %v428_v34, %v427_v25  ;;  %v442_v53 = vrot.slane %v441_v47, 2  ;;  %v436_v58 = vadd.f32 %v435_v32, %v434_v23  ;;  %875 = vmatprep.subr.bf16.mxu0 %v4489_v28  ;;  %v1001_v32 = vld [vmem:[#allocation2] sm:$0xff]  ;;  %v1002_v34 = vld [vmem:[#allocation2 + $0x8] sm:$0xff] }
 0x110   :  { %v454_v51 = vadd.f32 %v453_v45, %v452_v29  ;;  %v460_v52 = vrot.slane %v459_v46, 2  ;;  %v423_v54 = vrot.slane %v422_v44, 1  ;;  %v473_v62 = vadd.f32 %v472_v56, %v471_v50  ;;  %v4492_v29 = vld [vmem:[%s5327_s4 + $0xc] ss:$16 sps:$4 sm:$0xff]   ;;  %v1029_v28 = vld [vmem:[#allocation2 + $0xe0] sm:$0xff] }
 0x111   :  { %v468_v55 = vadd.f32 %v467_v48, %v466_v33  ;;  %v430_v59 = vrot.slane %v429_v49, 1  ;;  %v443_v61 = vadd.f32 %v442_v53, %v441_v47  ;;  %v437_v8 = vrot.slane %v436_v58, 1  ;;  %916 = vmatprep.subr.bf16.mxu1 %v4492_v29  ;;  %v1005_v33 = vld [vmem:[#allocation2 + $0x20] sm:$0xff]  ;;  %v1006_v45 = vld [vmem:[#allocation2 + $0x28] sm:$0xff] }
 0x112   :  { %v455_v57 = vrot.slane %v454_v51, 1  ;;  %v461_v60 = vadd.f32 %v460_v52, %v459_v46  ;;  %v424_v4 = vadd.f32 %v423_v54, %v422_v44  ;;  %v474_v7 = vrot.slane %v473_v62, 2  ;;  %v1026_v29 = vld [vmem:[#allocation2 + $0xc8] sm:$0xff] }
 0x113   :  { %v469_v63 = vrot.slane %v468_v55, 1  ;;  %v431_v9 = vadd.f32 %v430_v59, %v429_v49  ;;  %v444_v12 = vrot.slane %v443_v61, 1  ;;  %v438_v19 = vadd.f32 %v437_v8, %v436_v58 }
 0x114   :  { %v462_v2 = vrot.slane %v461_v60, 1  ;;  %v456_v3 = vadd.f32 %v455_v57, %v454_v51  ;;  %v475_v13 = vadd.f32 %v474_v7, %v473_v62  ;;  %v3955_v37 = vcombine.low %v1001_v32, %v1005_v33  ;;  %v1009_v7 = vld [vmem:[#allocation2 + $0x40] sm:$0xff] }
 0x115   :  { %v470_v16 = vadd.f32 %v469_v63, %v468_v55  ;;  %v445_v21 = vadd.f32 %v444_v12, %v443_v61  ;;  %v3956_v44 = vcombine.high %v1001_v32, %v1005_v33  ;;  %v3957_v46 = vcombine.low %v1002_v34, %v1006_v45  ;;  %v1010_v12 = vld [vmem:[#allocation2 + $0x48] sm:$0xff] }
 0x116   :  { %v463_v11 = vadd.f32 %v462_v2, %v461_v60  ;;  %v481_v14 = vsel %vm480_vm3, %v424_v4, %v456_v3  ;;  %v476_v18 = vrot.slane %v475_v13, 1  ;;  %v3958_v47 = vcombine.high %v1002_v34, %v1006_v45  ;;  %v1034_v45 = vld [vmem:[#allocation2 + $0x108] sm:$0xff] }
 0x117   :  { %v485_v20 = vpack.c.bf16 %v481_v14, %v481_v14  ;;  %v483_v23 = vsel %vm480_vm3, %v438_v19, %v470_v16  ;;  %v1021_v19 = vld [vmem:[#allocation2 + $0xa0] sm:$0xff] }
 0x118   :  { %v482_v15 = vsel %vm480_vm3, %v431_v9, %v463_v11  ;;  %v477_v22 = vadd.f32 %v476_v18, %v475_v13  ;;  %v487_v26 = vpack.c.bf16 %v483_v23, %v483_v23  ;;  %v1013_v11 = vld [vmem:[#allocation2 + $0x60] sm:$0xff]  ;;  %v1014_v13 = vld [vmem:[#allocation2 + $0x68] sm:$0xff] }
 0x119   :  { %v486_v17 = vpack.c.bf16 %v482_v15, %v482_v15  ;;  %v3964_v16 = vcombine.high %v1009_v7, %v1013_v11  ;;  %v1017_v18 = vld [vmem:[#allocation2 + $0x80] sm:$0xff]  ;;  %v3965_v23 = vcombine.low %v1010_v12, %v1014_v13 }
 0x11a   :  { %v484_v24 = vsel %vm480_vm3, %v445_v21, %v477_v22  ;;  %v1022_v21 = vld [vmem:[#allocation2 + $0xa8] sm:$0xff]  ;;  %v3963_v22 = vcombine.low %v1009_v7, %v1013_v11  ;;  %v1057_v7 = vld [vmem:[#allocation2 + $0x1c0] sm:$0xff] }
 0x11b   :  { %777 = vmatprep.mubr.bf16.mxu0 %v486_v17  ;;  %v488_v25 = vpack.c.bf16 %v484_v24, %v484_v24  ;;  %v3966_v17 = vcombine.high %v1010_v12, %v1014_v13  ;;  %v3972_v24 = vcombine.high %v1017_v18, %v1021_v19  ;;  %v1062_v11 = vld [vmem:[#allocation2 + $0x1e8] sm:$0xff] }
 0x11c   :  { %778 = vmatmul.mubr.bf16.vlgmr.msra.gmra.mrb[8].mxu0 %v485_v20  ;;  %v1018_v20 = vld [vmem:[#allocation2 + $0x88] sm:$0xff] }
 0x11d   :  { %907 = vmatprep.mubr.bf16.mxu0 %v4628_v0  ;;  %817 = vmatprep.mubr.bf16.mxu1 %v488_v25  ;;  %v3974_v25 = vcombine.high %v1018_v20, %v1022_v21  ;;  %v3973_v32 = vcombine.low %v1018_v20, %v1022_v21 }
 0x11e   :  { %818 = vmatmul.mubr.bf16.vlgmr.msra.gmra.mrb[8].mxu1 %v487_v26  ;;  %876 = vmatpush1.bf16.msra.mxu0 %v4487_v30  ;;  %v1025_v26 = vld [vmem:[#allocation2 + $0xc0] sm:$0xff]  ;;  %v1030_v30 = vld [vmem:[#allocation2 + $0xe8] sm:$0xff] }
 0x11f   :  { %948 = vmatprep.mubr.bf16.mxu1 %v4628_v0  ;;  %917 = vmatpush1.bf16.msra.mxu1 %v4490_v31  ;;  %v3971_v31 = vcombine.low %v1017_v18, %v1021_v19  ;;  %v3980_v33 = vcombine.high %v1025_v26, %v1029_v28  ;;  %v3982_v34 = vcombine.high %v1026_v29, %v1030_v30  ;;  %v1066_v18 = vld [vmem:[#allocation2 + $0x208] sm:$0xff] }
 0x120   :  { %2579 = vmatprep.subr.bf16.mxu0 %v3956_v44  ;;  %2661 = vmatprep.subr.bf16.mxu1 %v3958_v47  ;;  %v1037_v44 = vld [vmem:[#allocation2 + $0x120] sm:$0xff]  ;;  %v3979_v47 = vcombine.low %v1025_v26, %v1029_v28  ;;  %v1070_v19 = vld [vmem:[#allocation2 + $0x228] sm:$0xff] }
 0x121   :  { %v1074_v26 = vld [vmem:[#allocation2 + $0x248] sm:$0xff] }
 0x122   :  { %v1078_v28 = vld [vmem:[#allocation2 + $0x268] sm:$0xff] }
 0x1ef   :  { %v4302_v48 = vpop.f32.mrb[8].mxu0 }
 0x1f0   :  { %v4303_v49 = vpop.f32.mrb[9].mxu0 }
 0x1f1   :  { %v4304_v50 = vadd.f32 %v4303_v49, %v4302_v48  ;;  %v4305_v51 = vpop.f32.mrb[10].mxu0  ;;  %v4324_v53 = vpop.f32.mrb[8].mxu1  ;;  %v3981_v48 = vcombine.low %v1026_v29, %v1030_v30  ;;  %v4021_v30 = vcombine.low %v1066_v18, %v1070_v19 }
 0x1f2   :  { %v4306_v52 = vpop.f32.mrb[11].mxu0  ;;  %v4325_v54 = vpop.f32.mrb[9].mxu1  ;;  %v1041_v51 = vld [vmem:[#allocation2 + $0x140] sm:$0xff] }
 0x1f3   :  { %v4326_v55 = vadd.f32 %v4325_v54, %v4324_v53  ;;  %v4327_v56 = vpop.f32.mrb[10].mxu1  ;;  %v1045_v52 = vld [vmem:[#allocation2 + $0x160] sm:$0xff]  ;;  %v1042_v53 = vld [vmem:[#allocation2 + $0x148] sm:$0xff] }
 0x1f4   :  { %v4328_v57 = vpop.f32.mrb[11].mxu1  ;;  %v1046_v54 = vld [vmem:[#allocation2 + $0x168] sm:$0xff] }
 0x1f5   :  { %v820_v58 = vadd.f32 %v4326_v55, %v4304_v50  ;;  %v3996_v57 = vcombine.high %v1041_v51, %v1045_v52 }
 0x1f7   :  { %v825_v59 = vmul.f32 %v820_v58, %v820_v58  ;;  %v832_v2 = vsub.f32 0.0, %v820_v58 }
 0x1f9   :  { %v827_v60 = vrot.slane %v825_v59, 7  ;;  %v1049_v59 = vld [vmem:[#allocation2 + $0x180] sm:$0xff] }
 0x1fb   :  { %v829_v61 = vsub.f32 %v820_v58, %v827_v60  ;;  %v3998_v58 = vcombine.high %v1042_v53, %v1046_v54  ;;  %v1053_v60 = vld [vmem:[#allocation2 + $0x1a0] sm:$0xff] }
 0x1fc   :  { %v4003_v12 = vcombine.low %v1049_v59, %v1053_v60 }
 0x1fd   :  { %v830_v62 = vadd.f32 32.0, %v829_v61  ;;  %v1050_v61 = vld [vmem:[#allocation2 + $0x188] sm:$0xff] }
 0x1ff   :  { %4569 = vrsqrt.f32 %v830_v62  ;;  %v1054_v62 = vld [vmem:[#allocation2 + $0x1a8] sm:$0xff] }
 0x200   :  { %v4005_v13 = vcombine.low %v1050_v61, %v1054_v62 }
 0x209   :  { %v4570_v63 = vpop.eup %4569 }
 0x20a   :  { %v834_v3 = vrot.slane %v4570_v63, 1  ;;  %v840_v9 = vrot.slane %v4570_v63, %v4891_v39  ;;  %v3995_v63 = vcombine.low %v1041_v51, %v1045_v52  ;;  %v1090_v51 = vld [vmem:[#allocation2 + $0x2c8] sm:$0xff] }
 0x20b   :  { %v1094_v52 = vld [vmem:[#allocation2 + $0x2e8] sm:$0xff] }
 0x20c   :  { %v836_v4 = vmul.f32 %v834_v3, %v832_v2  ;;  %v3997_v2 = vcombine.low %v1042_v53, %v1046_v54  ;;  %v4004_v3 = vcombine.high %v1049_v59, %v1053_v60  ;;  %v1098_v59 = vld [vmem:[#allocation2 + $0x308] sm:$0xff] }
 0x20d   :  { %v1102_v60 = vld [vmem:[#allocation2 + $0x328] sm:$0xff] }
 0x20e   :  { %v844_v8 = vrot.slane %v836_v4, %v4883_v35  ;;  %v4006_v4 = vcombine.high %v1050_v61, %v1054_v62  ;;  %v4045_v62 = vcombine.low %v1090_v51, %v1094_v52 }
 0x210   :  { %v845_v14 = vsel %vm480_vm3, %v840_v9, %v844_v8  ;;  %v1061_v8 = vld [vmem:[#allocation2 + $0x1e0] sm:$0xff]  ;;  %v1058_v9 = vld [vmem:[#allocation2 + $0x1c8] sm:$0xff] }
 0x211   :  { %v846_v15 = vpack.c.bf16 %v845_v14, %v845_v14  ;;  %v4012_v14 = vcombine.high %v1057_v7, %v1061_v8  ;;  %v4011_v20 = vcombine.low %v1057_v7, %v1061_v8  ;;  %v4013_v21 = vcombine.low %v1058_v9, %v1062_v11  ;;  %v1106_v7 = vld [vmem:[#allocation2 + $0x348] sm:$0xff] }
 0x212   :  { %v1110_v8 = vld [vmem:[#allocation2 + $0x368] sm:$0xff] }
 0x213   :  { %3953 = vmatmul.mubr.msk.bf16.vlgmr.msra.gmra.mrb[12].mxu0 %vm871_vm4, %v846_v15  ;;  %3954 = vmatmul.mubr.msk.bf16.vlgmr.msra.gmra.mrb[12].mxu1 %vm871_vm4, %v846_v15  ;;  %v4014_v15 = vcombine.high %v1058_v9, %v1062_v11  ;;  %v4053_v11 = vcombine.low %v1098_v59, %v1102_v60 }
 0x214   :  { %2580 = vmatpush1.bf16.msra.mxu0 %v3955_v37  ;;  %2662 = vmatpush1.bf16.msra.mxu1 %v3957_v46  ;;  %v1033_v37 = vld [vmem:[#allocation2 + $0x100] sm:$0xff]  ;;  %v1038_v46 = vld [vmem:[#allocation2 + $0x128] sm:$0xff] }
 0x215   :  { %2581 = vmatprep.subr.bf16.mxu0 %v3964_v16  ;;  %2663 = vmatprep.subr.bf16.mxu1 %v3966_v17  ;;  %v3988_v49 = vcombine.high %v1033_v37, %v1037_v44  ;;  %v3990_v50 = vcombine.high %v1034_v45, %v1038_v46  ;;  %v3987_v55 = vcombine.low %v1033_v37, %v1037_v44  ;;  %v1065_v16 = vld [vmem:[#allocation2 + $0x200] sm:$0xff]  ;;  %v1082_v37 = vld [vmem:[#allocation2 + $0x288] sm:$0xff] }
 0x216   :  { %v3989_v56 = vcombine.low %v1034_v45, %v1038_v46  ;;  %v1069_v17 = vld [vmem:[#allocation2 + $0x220] sm:$0xff]  ;;  %v1086_v44 = vld [vmem:[#allocation2 + $0x2a8] sm:$0xff]  ;;  %v4029_v46 = vcombine.low %v1074_v26, %v1078_v28 }
 0x217   :  { %v4019_v29 = vcombine.low %v1065_v16, %v1069_v17  ;;  %v4037_v54 = vcombine.low %v1082_v37, %v1086_v44 }
 0x218   :  { %2582 = vmatpush1.bf16.msra.mxu0 %v3963_v22  ;;  %2664 = vmatpush1.bf16.msra.mxu1 %v3965_v23  ;;  %v4020_v22 = vcombine.high %v1065_v16, %v1069_v17  ;;  %v4022_v23 = vcombine.high %v1066_v18, %v1070_v19  ;;  %v1113_v16 = vld [vmem:[#allocation2 + $0x380] sm:$0xff]  ;;  %v1114_v18 = vld [vmem:[#allocation2 + $0x388] sm:$0xff] }
 0x219   :  { %2583 = vmatprep.subr.bf16.mxu0 %v3972_v24  ;;  %2665 = vmatprep.subr.bf16.mxu1 %v3974_v25  ;;  %v1073_v24 = vld [vmem:[#allocation2 + $0x240] sm:$0xff] }
 0x21a   :  { %v1077_v25 = vld [vmem:[#allocation2 + $0x260] sm:$0xff] }
 0x21b   :  { %v4027_v45 = vcombine.low %v1073_v24, %v1077_v25  ;;  %v1117_v17 = vld [vmem:[#allocation2 + $0x3a0] sm:$0xff] }
 0x21c   :  { %2584 = vmatpush1.bf16.msra.mxu0 %v3971_v31  ;;  %2666 = vmatpush1.bf16.msra.mxu1 %v3973_v32  ;;  %v4028_v31 = vcombine.high %v1073_v24, %v1077_v25  ;;  %v4030_v32 = vcombine.high %v1074_v26, %v1078_v28  ;;  %v4068_v19 = vcombine.high %v1113_v16, %v1117_v17  ;;  %v1121_v24 = vld [vmem:[#allocation2 + $0x3c0] sm:$0xff]  ;;  %v1122_v26 = vld [vmem:[#allocation2 + $0x3c8] sm:$0xff] }
 0x21d   :  { %2585 = vmatprep.subr.bf16.mxu0 %v3980_v33  ;;  %2667 = vmatprep.subr.bf16.mxu1 %v3982_v34  ;;  %v1081_v33 = vld [vmem:[#allocation2 + $0x280] sm:$0xff] }
 0x21e   :  { %v1085_v34 = vld [vmem:[#allocation2 + $0x2a0] sm:$0xff] }
 0x21f   :  { %v4035_v53 = vcombine.low %v1081_v33, %v1085_v34  ;;  %v1125_v25 = vld [vmem:[#allocation2 + $0x3e0] sm:$0xff] }
 0x220   :  { %2586 = vmatpush1.bf16.msra.mxu0 %v3979_v47  ;;  %2668 = vmatpush1.bf16.msra.mxu1 %v3981_v48  ;;  %v4036_v47 = vcombine.high %v1081_v33, %v1085_v34  ;;  %v4038_v48 = vcombine.high %v1082_v37, %v1086_v44  ;;  %v4076_v28 = vcombine.high %v1121_v24, %v1125_v25  ;;  %v1129_v33 = vld [vmem:[#allocation2 + $0x400] sm:$0xff]  ;;  %v1130_v37 = vld [vmem:[#allocation2 + $0x408] sm:$0xff] }
 0x221   :  { %2587 = vmatprep.subr.bf16.mxu0 %v3988_v49  ;;  %2669 = vmatprep.subr.bf16.mxu1 %v3990_v50  ;;  %v1089_v49 = vld [vmem:[#allocation2 + $0x2c0] sm:$0xff] }
 0x222   :  { %v1093_v50 = vld [vmem:[#allocation2 + $0x2e0] sm:$0xff] }
 0x223   :  { %v4043_v61 = vcombine.low %v1089_v49, %v1093_v50  ;;  %v1133_v34 = vld [vmem:[#allocation2 + $0x420] sm:$0xff] }
 0x224   :  { %2588 = vmatpush1.bf16.msra.mxu0 %v3987_v55  ;;  %2670 = vmatpush1.bf16.msra.mxu1 %v3989_v56  ;;  %v4044_v55 = vcombine.high %v1089_v49, %v1093_v50  ;;  %v4046_v56 = vcombine.high %v1090_v51, %v1094_v52  ;;  %v4084_v44 = vcombine.high %v1129_v33, %v1133_v34 }
 0x225   :  { %2589 = vmatprep.subr.bf16.mxu0 %v3996_v57  ;;  %2671 = vmatprep.subr.bf16.mxu1 %v3998_v58  ;;  %v1097_v57 = vld [vmem:[#allocation2 + $0x300] sm:$0xff] }
 0x226   :  { %v1101_v58 = vld [vmem:[#allocation2 + $0x320] sm:$0xff] }
 0x227   :  { %v4051_v9 = vcombine.low %v1097_v57, %v1101_v58 }
 0x228   :  { %2590 = vmatpush1.bf16.msra.mxu0 %v3995_v63  ;;  %2672 = vmatpush1.bf16.msra.mxu1 %v3997_v2  ;;  %v4052_v63 = vcombine.high %v1097_v57, %v1101_v58  ;;  %v4054_v2 = vcombine.high %v1098_v59, %v1102_v60 }
 0x229   :  { %2591 = vmatprep.subr.bf16.mxu0 %v4004_v3  ;;  %2673 = vmatprep.subr.bf16.mxu1 %v4006_v4  ;;  %v1105_v3 = vld [vmem:[#allocation2 + $0x340] sm:$0xff] }
 0x22a   :  { %v1109_v4 = vld [vmem:[#allocation2 + $0x360] sm:$0xff] }
 0x22c   :  { %2592 = vmatpush1.bf16.msra.mxu0 %v4003_v12  ;;  %2674 = vmatpush1.bf16.msra.mxu1 %v4005_v13  ;;  %v4060_v12 = vcombine.high %v1105_v3, %v1109_v4  ;;  %v4062_v13 = vcombine.high %v1106_v7, %v1110_v8 }
 0x22d   :  { %2593 = vmatprep.subr.bf16.mxu0 %v4012_v14  ;;  %2675 = vmatprep.subr.bf16.mxu1 %v4014_v15  ;;  %v4059_v14 = vcombine.low %v1105_v3, %v1109_v4  ;;  %v4061_v15 = vcombine.low %v1106_v7, %v1110_v8  ;;  %v1137_v8 = vld [vmem:[#allocation2 + $0x440] sm:$0xff] }
 0x230   :  { %2594 = vmatpush1.bf16.msra.mxu0 %v4011_v20  ;;  %2676 = vmatpush1.bf16.msra.mxu1 %v4013_v21  ;;  %v1118_v20 = vld [vmem:[#allocation2 + $0x3a8] sm:$0xff]  ;;  %v4067_v21 = vcombine.low %v1113_v16, %v1117_v17  ;;  %v1149_v16 = vld [vmem:[#allocation2 + $0x4a0] sm:$0xff] }
 0x231   :  { %2595 = vmatprep.subr.bf16.mxu0 %v4020_v22  ;;  %2677 = vmatprep.subr.bf16.mxu1 %v4022_v23  ;;  %v4069_v22 = vcombine.low %v1114_v18, %v1118_v20  ;;  %v4070_v23 = vcombine.high %v1114_v18, %v1118_v20  ;;  %v1146_v17 = vld [vmem:[#allocation2 + $0x488] sm:$0xff] }
 0x232   :  { %v1150_v18 = vld [vmem:[#allocation2 + $0x4a8] sm:$0xff] }
 0x234   :  { %2596 = vmatpush1.bf16.msra.mxu0 %v4019_v29  ;;  %2678 = vmatpush1.bf16.msra.mxu1 %v4021_v30  ;;  %v1126_v29 = vld [vmem:[#allocation2 + $0x3e8] sm:$0xff]  ;;  %v4075_v30 = vcombine.low %v1121_v24, %v1125_v25  ;;  %v1153_v24 = vld [vmem:[#allocation2 + $0x4c0] sm:$0xff] }
 0x235   :  { %2597 = vmatprep.subr.bf16.mxu0 %v4028_v31  ;;  %2679 = vmatprep.subr.bf16.mxu1 %v4030_v32  ;;  %v4077_v31 = vcombine.low %v1122_v26, %v1126_v29  ;;  %v4078_v32 = vcombine.high %v1122_v26, %v1126_v29  ;;  %v1157_v25 = vld [vmem:[#allocation2 + $0x4e0] sm:$0xff]  ;;  %v1154_v26 = vld [vmem:[#allocation2 + $0x4c8] sm:$0xff] }
 0x238   :  { %2598 = vmatpush1.bf16.msra.mxu0 %v4027_v45  ;;  %2680 = vmatpush1.bf16.msra.mxu1 %v4029_v46  ;;  %v1134_v45 = vld [vmem:[#allocation2 + $0x428] sm:$0xff]  ;;  %v4083_v46 = vcombine.low %v1129_v33, %v1133_v34  ;;  %v1161_v33 = vld [vmem:[#allocation2 + $0x500] sm:$0xff] }
 0x239   :  { %2599 = vmatprep.subr.bf16.mxu0 %v4036_v47  ;;  %2681 = vmatprep.subr.bf16.mxu1 %v4038_v48  ;;  %v4085_v47 = vcombine.low %v1130_v37, %v1134_v45  ;;  %v4086_v48 = vcombine.high %v1130_v37, %v1134_v45  ;;  %v1165_v34 = vld [vmem:[#allocation2 + $0x520] sm:$0xff]  ;;  %v1162_v37 = vld [vmem:[#allocation2 + $0x508] sm:$0xff]  ;;  %v4107_v45 = vcombine.low %v1153_v24, %v1157_v25 }
 0x23c   :  { %2600 = vmatpush1.bf16.msra.mxu0 %v4035_v53  ;;  %2682 = vmatpush1.bf16.msra.mxu1 %v4037_v54 }
 0x23d   :  { %2601 = vmatprep.subr.bf16.mxu0 %v4044_v55  ;;  %2683 = vmatprep.subr.bf16.mxu1 %v4046_v56 }
 0x240   :  { %2602 = vmatpush1.bf16.msra.mxu0 %v4043_v61  ;;  %2684 = vmatpush1.bf16.msra.mxu1 %v4045_v62 }
 0x241   :  { %2603 = vmatprep.subr.bf16.mxu0 %v4052_v63  ;;  %2685 = vmatprep.subr.bf16.mxu1 %v4054_v2 }
 0x244   :  { %2604 = vmatpush1.bf16.msra.mxu0 %v4051_v9  ;;  %2686 = vmatpush1.bf16.msra.mxu1 %v4053_v11  ;;  %v1141_v11 = vld [vmem:[#allocation2 + $0x460] sm:$0xff] }
 0x245   :  { %2605 = vmatprep.subr.bf16.mxu0 %v4060_v12  ;;  %2687 = vmatprep.subr.bf16.mxu1 %v4062_v13  ;;  %v1138_v12 = vld [vmem:[#allocation2 + $0x448] sm:$0xff]  ;;  %v4091_v20 = vcombine.low %v1137_v8, %v1141_v11 }
 0x246   :  { %v1142_v13 = vld [vmem:[#allocation2 + $0x468] sm:$0xff] }
 0x248   :  { %2606 = vmatpush1.bf16.msra.mxu0 %v4059_v14  ;;  %2688 = vmatpush1.bf16.msra.mxu1 %v4061_v15  ;;  %v1145_v15 = vld [vmem:[#allocation2 + $0x480] sm:$0xff] }
 0x249   :  { %2607 = vmatprep.subr.bf16.mxu0 %v4068_v19  ;;  %2689 = vmatprep.subr.bf16.mxu1 %v4070_v23  ;;  %v4102_v23 = vcombine.high %v1146_v17, %v1150_v18  ;;  %v4099_v29 = vcombine.low %v1145_v15, %v1149_v16 }
 0x24c   :  { %2608 = vmatpush1.bf16.msra.mxu0 %v4067_v21  ;;  %2690 = vmatpush1.bf16.msra.mxu1 %v4069_v22  ;;  %v4093_v21 = vcombine.low %v1138_v12, %v1142_v13  ;;  %v4100_v22 = vcombine.high %v1145_v15, %v1149_v16  ;;  %v1194_v16 = vld [vmem:[#allocation2 + $0x608] sm:$0xff] }
 0x24d   :  { %2609 = vmatprep.subr.bf16.mxu0 %v4076_v28  ;;  %2691 = vmatprep.subr.bf16.mxu1 %v4078_v32  ;;  %v1158_v28 = vld [vmem:[#allocation2 + $0x4e8] sm:$0xff] }
 0x24e   :  { %v4110_v32 = vcombine.high %v1154_v26, %v1158_v28 }
 0x250   :  { %2610 = vmatpush1.bf16.msra.mxu0 %v4075_v30  ;;  %2692 = vmatpush1.bf16.msra.mxu1 %v4077_v31  ;;  %v4101_v30 = vcombine.low %v1146_v17, %v1150_v18  ;;  %v4108_v31 = vcombine.high %v1153_v24, %v1157_v25  ;;  %v1198_v17 = vld [vmem:[#allocation2 + $0x628] sm:$0xff]  ;;  %v1205_v24 = vld [vmem:[#allocation2 + $0x660] sm:$0xff] }
 0x251   :  { %2620 = vmatprep.subr.bf16.mxu0 %v4084_v44  ;;  %2702 = vmatprep.subr.bf16.mxu1 %v4086_v48  ;;  %v1166_v44 = vld [vmem:[#allocation2 + $0x528] sm:$0xff] }
 0x252   :  { %v4118_v48 = vcombine.high %v1162_v37, %v1166_v44  ;;  %v1202_v25 = vld [vmem:[#allocation2 + $0x648] sm:$0xff] }
 0x2e6   :  { %v909_v49 = vpop.f32.mrb[12].mxu0  ;;  %v4966_v50 = vpop.f32.mrb[12].mxu1 }
 0x2e7   :  { %v960_v51 = vrot.slane %v909_v49, %v4883_v35  ;;  %v911_v52 = vpop.f32.mrb[13].mxu0  ;;  %v952_v53 = vpop.f32.mrb[13].mxu1  ;;  %v980_v59 = vrot.slane %v909_v49, %v4891_v39  ;;  %v1169_v49 = vld [vmem:[#allocation2 + $0x540] sm:$0xff] }
 0x2e8   :  { %v964_v54 = vrot.slane %v911_v52, %v4883_v35  ;;  %v972_v55 = vrot.slane %v952_v53, %v4883_v35  ;;  %v913_v56 = vpop.f32.mrb[14].mxu0  ;;  %v954_v57 = vpop.f32.mrb[14].mxu1  ;;  %v984_v63 = vrot.slane %v911_v52, %v4891_v39  ;;  %v992_v4 = vrot.slane %v952_v53, %v4891_v39  ;;  %v1170_v52 = vld [vmem:[#allocation2 + $0x548] sm:$0xff] }
 0x2e9   :  { %v973_v58 = vmul.f32 %v960_v51, %v4911_v1  ;;  %v914_v60 = vpop.f32.mrb[15].mxu0  ;;  %v955_v61 = vpop.f32.mrb[15].mxu1  ;;  %v1173_v51 = vld [vmem:[#allocation2 + $0x560] sm:$0xff]  ;;  %v1174_v53 = vld [vmem:[#allocation2 + $0x568] sm:$0xff] }
 0x2ea   :  { %v974_v62 = vmul.f32 %v964_v54, %v4915_v6  ;;  %v976_v2 = vmul.f32 %v972_v55, %v4921_v10  ;;  %v4092_v6 = vcombine.high %v1137_v8, %v1141_v11  ;;  %v4094_v10 = vcombine.high %v1138_v12, %v1142_v13  ;;  %v1178_v60 = vld [vmem:[#allocation2 + $0x588] sm:$0xff] }
 0x2eb   :  { %v993_v3 = vadd.f32 %v980_v59, %v973_v58  ;;  %v4115_v54 = vcombine.low %v1161_v33, %v1165_v34  ;;  %v4117_v55 = vcombine.low %v1162_v37, %v1166_v44  ;;  %v4124_v56 = vcombine.high %v1169_v49, %v1173_v51  ;;  %v1177_v58 = vld [vmem:[#allocation2 + $0x580] sm:$0xff]  ;;  %v1182_v61 = vld [vmem:[#allocation2 + $0x5a8] sm:$0xff] }
 0x2ec   :  { %v994_v7 = vadd.f32 %v984_v63, %v974_v62  ;;  %v996_v9 = vadd.f32 %v992_v4, %v976_v2  ;;  %v4126_v57 = vcombine.high %v1170_v52, %v1174_v53  ;;  %v1181_v59 = vld [vmem:[#allocation2 + $0x5a0] sm:$0xff]  ;;  %v4123_v62 = vcombine.low %v1169_v49, %v1173_v51  ;;  %v1186_v8 = vld [vmem:[#allocation2 + $0x5c8] sm:$0xff] }
 0x2ed   :  { %v4979_v14 = vpack.c.bf16 %v993_v3, %v993_v3  ;;  %v4125_v63 = vcombine.low %v1170_v52, %v1174_v53  ;;  %v4132_v2 = vcombine.high %v1177_v58, %v1181_v59  ;;  %v4134_v3 = vcombine.high %v1178_v60, %v1182_v61  ;;  %v1185_v4 = vld [vmem:[#allocation2 + $0x5c0] sm:$0xff]  ;;  %v1214_v37 = vld [vmem:[#allocation2 + $0x6a8] sm:$0xff] }
 0x2ee   :  { %v4977_v1 = vpack.c.bf16 %v994_v7, %v994_v7  ;;  %v4983_v19 = vpack.c.bf16 %v996_v9, %v996_v9  ;;  %v1189_v7 = vld [vmem:[#allocation2 + $0x5e0] sm:$0xff]  ;;  %v1190_v9 = vld [vmem:[#allocation2 + $0x5e8] sm:$0xff]  ;;  %v4131_v11 = vcombine.low %v1177_v58, %v1181_v59  ;;  %v4133_v12 = vcombine.low %v1178_v60, %v1182_v61 }
 0x2ef   :  { %v4140_v13 = vcombine.high %v1185_v4, %v1189_v7  ;;  %v4142_v15 = vcombine.high %v1186_v8, %v1190_v9  ;;  %v4139_v18 = vcombine.low %v1185_v4, %v1189_v7  ;;  %v1221_v49 = vld [vmem:[#allocation2 + $0x6e0] sm:$0xff]  ;;  %v1218_v51 = vld [vmem:[#allocation2 + $0x6c8] sm:$0xff] }
 0x2f0   :  { %2611 = vmatprep.mubr.bf16.mxu0 %v4977_v1  ;;  %2693 = vmatprep.mubr.bf16.mxu1 %v4977_v1  ;;  %v1222_v52 = vld [vmem:[#allocation2 + $0x6e8] sm:$0xff]  ;;  %v1229_v58 = vld [vmem:[#allocation2 + $0x720] sm:$0xff] }
 0x2f1   :  { %2612 = vmatmul.mubr.bf16.vlgmr.msra.gmra.mrb[16].mxu0 %v4979_v14  ;;  %2694 = vmatmul.mubr.bf16.vlgmr.msra.gmra.mrb[16].mxu1 %v4979_v14  ;;  %v1226_v59 = vld [vmem:[#allocation2 + $0x708] sm:$0xff]  ;;  %v1237_v4 = vld [vmem:[#allocation2 + $0x760] sm:$0xff] }
 0x2f2   :  { %2621 = vmatpush1.bf16.msra.mxu0 %v4083_v46  ;;  %2703 = vmatpush1.bf16.msra.mxu1 %v4085_v47  ;;  %v4109_v46 = vcombine.low %v1154_v26, %v1158_v28  ;;  %v4116_v47 = vcombine.high %v1161_v33, %v1165_v34  ;;  %v1206_v26 = vld [vmem:[#allocation2 + $0x668] sm:$0xff]  ;;  %v1213_v33 = vld [vmem:[#allocation2 + $0x6a0] sm:$0xff] }
 0x2f3   :  { %2652 = vmatprep.mubr.bf16.mxu0 %v4983_v19  ;;  %2734 = vmatprep.mubr.bf16.mxu1 %v4983_v19  ;;  %v1210_v34 = vld [vmem:[#allocation2 + $0x688] sm:$0xff] }
 0x2f4   :  { %2622 = vmatprep.subr.bf16.mxu0 %v4092_v6  ;;  %2704 = vmatprep.subr.bf16.mxu1 %v4094_v10  ;;  %v1193_v6 = vld [vmem:[#allocation2 + $0x600] sm:$0xff]  ;;  %v1230_v60 = vld [vmem:[#allocation2 + $0x728] sm:$0xff] }
 0x2f5   :  { %v1197_v10 = vld [vmem:[#allocation2 + $0x620] sm:$0xff]  ;;  %v1234_v7 = vld [vmem:[#allocation2 + $0x748] sm:$0xff] }
 0x2f6   :  { %2623 = vmatpush1.bf16.msra.mxu0 %v4091_v20  ;;  %2705 = vmatpush1.bf16.msra.mxu1 %v4093_v21  ;;  %v4141_v20 = vcombine.low %v1186_v8, %v1190_v9  ;;  %v4148_v21 = vcombine.high %v1193_v6, %v1197_v10  ;;  %v4147_v28 = vcombine.low %v1193_v6, %v1197_v10  ;;  %v1238_v8 = vld [vmem:[#allocation2 + $0x768] sm:$0xff]  ;;  %v1245_v6 = vld [vmem:[#allocation2 + $0x7a0] sm:$0xff] }
 0x2f7   :  { %2624 = vmatprep.subr.bf16.mxu0 %v4100_v22  ;;  %2706 = vmatprep.subr.bf16.mxu1 %v4102_v23  ;;  %v4150_v22 = vcombine.high %v1194_v16, %v1198_v17  ;;  %v1201_v23 = vld [vmem:[#allocation2 + $0x640] sm:$0xff]  ;;  %v1242_v10 = vld [vmem:[#allocation2 + $0x788] sm:$0xff] }
 0x2f8   :  { %v4155_v44 = vcombine.low %v1201_v23, %v1205_v24 }
 0x2fa   :  { %2625 = vmatpush1.bf16.msra.mxu0 %v4099_v29  ;;  %2707 = vmatpush1.bf16.msra.mxu1 %v4101_v30  ;;  %v4149_v29 = vcombine.low %v1194_v16, %v1198_v17  ;;  %v4156_v30 = vcombine.high %v1201_v23, %v1205_v24  ;;  %v1246_v16 = vld [vmem:[#allocation2 + $0x7a8] sm:$0xff]  ;;  %v1249_v23 = vld [vmem:[#allocation2 + $0x7c0] sm:$0xff] }
 0x2fb   :  { %2626 = vmatprep.subr.bf16.mxu0 %v4108_v31  ;;  %2708 = vmatprep.subr.bf16.mxu1 %v4110_v32  ;;  %v4158_v31 = vcombine.high %v1202_v25, %v1206_v26  ;;  %v1209_v32 = vld [vmem:[#allocation2 + $0x680] sm:$0xff] }
 0x2fc   :  { %v4163_v53 = vcombine.low %v1209_v32, %v1213_v33  ;;  %v1253_v24 = vld [vmem:[#allocation2 + $0x7e0] sm:$0xff] }
 0x2fe   :  { %2627 = vmatpush1.bf16.msra.mxu0 %v4107_v45  ;;  %2709 = vmatpush1.bf16.msra.mxu1 %v4109_v46  ;;  %v4157_v45 = vcombine.low %v1202_v25, %v1206_v26  ;;  %v4164_v46 = vcombine.high %v1209_v32, %v1213_v33  ;;  %v1250_v25 = vld [vmem:[#allocation2 + $0x7c8] sm:$0xff]  ;;  %v1003_v33 = vld [vmem:[#allocation2 + $0x10] sm:$0xff] }
 0x2ff   :  { %2628 = vmatprep.subr.bf16.mxu0 %v4116_v47  ;;  %2710 = vmatprep.subr.bf16.mxu1 %v4118_v48  ;;  %v4166_v47 = vcombine.high %v1210_v34, %v1214_v37  ;;  %v1217_v48 = vld [vmem:[#allocation2 + $0x6c0] sm:$0xff]  ;;  %v1254_v26 = vld [vmem:[#allocation2 + $0x7e8] sm:$0xff] }
 0x300   :  { %v4171_v61 = vcombine.low %v1217_v48, %v1221_v49  ;;  %v4206_v32 = vcombine.high %v1250_v25, %v1254_v26 }
 0x302   :  { %2629 = vmatpush1.bf16.msra.mxu0 %v4115_v54  ;;  %2711 = vmatpush1.bf16.msra.mxu1 %v4117_v55  ;;  %v4165_v54 = vcombine.low %v1210_v34, %v1214_v37  ;;  %v4172_v55 = vcombine.high %v1217_v48, %v1221_v49  ;;  %v1007_v34 = vld [vmem:[#allocation2 + $0x30] sm:$0xff]  ;;  %v1004_v37 = vld [vmem:[#allocation2 + $0x18] sm:$0xff] }
 0x303   :  { %2630 = vmatprep.subr.bf16.mxu0 %v4124_v56  ;;  %2712 = vmatprep.subr.bf16.mxu1 %v4126_v57  ;;  %v4174_v56 = vcombine.high %v1218_v51, %v1222_v52  ;;  %v1225_v57 = vld [vmem:[#allocation2 + $0x700] sm:$0xff]  ;;  %v3960_v49 = vcombine.high %v1003_v33, %v1007_v34 }
 0x304   :  { %v4179_v9 = vcombine.low %v1225_v57, %v1229_v58 }
 0x306   :  { %2631 = vmatpush1.bf16.msra.mxu0 %v4123_v62  ;;  %2713 = vmatpush1.bf16.msra.mxu1 %v4125_v63  ;;  %v4173_v62 = vcombine.low %v1218_v51, %v1222_v52  ;;  %v4180_v63 = vcombine.high %v1225_v57, %v1229_v58  ;;  %v1011_v51 = vld [vmem:[#allocation2 + $0x50] sm:$0xff] }
 0x307   :  { %2632 = vmatprep.subr.bf16.mxu0 %v4132_v2  ;;  %2714 = vmatprep.subr.bf16.mxu1 %v4134_v3  ;;  %v4182_v2 = vcombine.high %v1226_v59, %v1230_v60  ;;  %v1233_v3 = vld [vmem:[#allocation2 + $0x740] sm:$0xff]  ;;  %v1015_v52 = vld [vmem:[#allocation2 + $0x70] sm:$0xff] }
 0x308   :  { %v4187_v17 = vcombine.low %v1233_v3, %v1237_v4  ;;  %v3968_v57 = vcombine.high %v1011_v51, %v1015_v52 }
 0x30a   :  { %2633 = vmatpush1.bf16.msra.mxu0 %v4131_v11  ;;  %2715 = vmatpush1.bf16.msra.mxu1 %v4133_v12  ;;  %v4181_v11 = vcombine.low %v1226_v59, %v1230_v60  ;;  %v4188_v12 = vcombine.high %v1233_v3, %v1237_v4  ;;  %v1019_v59 = vld [vmem:[#allocation2 + $0x90] sm:$0xff] }
 0x30b   :  { %2634 = vmatprep.subr.bf16.mxu0 %v4140_v13  ;;  %2716 = vmatprep.subr.bf16.mxu1 %v4142_v15  ;;  %v4190_v13 = vcombine.high %v1234_v7, %v1238_v8  ;;  %v1241_v15 = vld [vmem:[#allocation2 + $0x780] sm:$0xff]  ;;  %v1023_v60 = vld [vmem:[#allocation2 + $0xb0] sm:$0xff] }
 0x30c   :  { %v3976_v3 = vcombine.high %v1019_v59, %v1023_v60 }
 0x30e   :  { %2635 = vmatpush1.bf16.msra.mxu0 %v4139_v18  ;;  %2717 = vmatpush1.bf16.msra.mxu1 %v4141_v20  ;;  %v4189_v18 = vcombine.low %v1234_v7, %v1238_v8  ;;  %v968_v20 = vrot.slane %v4966_v50, %v4883_v35  ;;  %v1027_v7 = vld [vmem:[#allocation2 + $0xd0] sm:$0xff] }
 0x30f   :  { %2636 = vmatprep.subr.bf16.mxu0 %v4148_v21  ;;  %2718 = vmatprep.subr.bf16.mxu1 %v4150_v22  ;;  %v4196_v21 = vcombine.high %v1241_v15, %v1245_v6  ;;  %v4198_v22 = vcombine.high %v1242_v10, %v1246_v16  ;;  %v1031_v8 = vld [vmem:[#allocation2 + $0xf0] sm:$0xff] }
 0x312   :  { %2637 = vmatpush1.bf16.msra.mxu0 %v4147_v28  ;;  %2719 = vmatpush1.bf16.msra.mxu1 %v4149_v29  ;;  %v4195_v28 = vcombine.low %v1241_v15, %v1245_v6  ;;  %v4197_v29 = vcombine.low %v1242_v10, %v1246_v16  ;;  %v3984_v15 = vcombine.high %v1027_v7, %v1031_v8  ;;  %v1035_v10 = vld [vmem:[#allocation2 + $0x110] sm:$0xff] }
 0x313   :  { %2638 = vmatprep.subr.bf16.mxu0 %v4156_v30  ;;  %2720 = vmatprep.subr.bf16.mxu1 %v4158_v31  ;;  %v975_v30 = vmul.f32 %v968_v20, %v4913_v5  ;;  %v4204_v31 = vcombine.high %v1249_v23, %v1253_v24  ;;  %v1039_v16 = vld [vmem:[#allocation2 + $0x130] sm:$0xff] }
 0x316   :  { %2639 = vmatpush1.bf16.msra.mxu0 %v4155_v44  ;;  %2721 = vmatpush1.bf16.msra.mxu1 %v4157_v45  ;;  %v1008_v44 = vld [vmem:[#allocation2 + $0x38] sm:$0xff]  ;;  %v988_v45 = vrot.slane %v4966_v50, %v4891_v39 }
 0x317   :  { %2640 = vmatprep.subr.bf16.mxu0 %v4164_v46  ;;  %2722 = vmatprep.subr.bf16.mxu1 %v4166_v47  ;;  %v4203_v46 = vcombine.low %v1249_v23, %v1253_v24  ;;  %v4205_v47 = vcombine.low %v1250_v25, %v1254_v26  ;;  %v3962_v5 = vcombine.high %v1004_v37, %v1008_v44  ;;  %v1043_v23 = vld [vmem:[#allocation2 + $0x150] sm:$0xff]  ;;  %v1044_v25 = vld [vmem:[#allocation2 + $0x158] sm:$0xff] }
 0x318   :  { %v995_v48 = vadd.f32 %v988_v45, %v975_v30  ;;  %v3961_v50 = vcombine.low %v1004_v37, %v1008_v44  ;;  %v1047_v24 = vld [vmem:[#allocation2 + $0x170] sm:$0xff]  ;;  %v1048_v26 = vld [vmem:[#allocation2 + $0x178] sm:$0xff] }
 0x319   :  { %v4000_v30 = vcombine.high %v1043_v23, %v1047_v24  ;;  %v1056_v37 = vld [vmem:[#allocation2 + $0x1b8] sm:$0xff]  ;;  %v3999_v44 = vcombine.low %v1043_v23, %v1047_v24  ;;  %v4001_v45 = vcombine.low %v1044_v25, %v1048_v26 }
 0x31a   :  { %2641 = vmatpush1.bf16.msra.mxu0 %v4163_v53  ;;  %2723 = vmatpush1.bf16.msra.mxu1 %v4165_v54  ;;  %v1012_v53 = vld [vmem:[#allocation2 + $0x58] sm:$0xff] }
 0x31b   :  { %2642 = vmatprep.subr.bf16.mxu0 %v4172_v55  ;;  %2724 = vmatprep.subr.bf16.mxu1 %v4174_v56  ;;  %v1016_v54 = vld [vmem:[#allocation2 + $0x78] sm:$0xff]  ;;  %v3959_v55 = vcombine.low %v1003_v33, %v1007_v34  ;;  %v4994_v56 = vpack.c.bf16 %v995_v48, %v995_v48  ;;  %v1055_v33 = vld [vmem:[#allocation2 + $0x1b0] sm:$0xff] }
 0x31c   :  { %v3970_v58 = vcombine.high %v1012_v53, %v1016_v54  ;;  %v1052_v34 = vld [vmem:[#allocation2 + $0x198] sm:$0xff]  ;;  %v1059_v48 = vld [vmem:[#allocation2 + $0x1d0] sm:$0xff] }
 0x31d   :  { %v1096_v23 = vld [vmem:[#allocation2 + $0x2f8] sm:$0xff] }
 0x31e   :  { %2643 = vmatpush1.bf16.msra.mxu0 %v4171_v61  ;;  %2725 = vmatpush1.bf16.msra.mxu1 %v4173_v62  ;;  %v1020_v61 = vld [vmem:[#allocation2 + $0x98] sm:$0xff] }
 0x31f   :  { %2644 = vmatprep.subr.bf16.mxu0 %v4180_v63  ;;  %2726 = vmatprep.subr.bf16.mxu1 %v4182_v2  ;;  %v1024_v62 = vld [vmem:[#allocation2 + $0xb8] sm:$0xff]  ;;  %v3967_v63 = vcombine.low %v1011_v51, %v1015_v52  ;;  %v3969_v2 = vcombine.low %v1012_v53, %v1016_v54  ;;  %v4009_v53 = vcombine.low %v1052_v34, %v1056_v37 }
 0x320   :  { %v3978_v4 = vcombine.high %v1020_v61, %v1024_v62  ;;  %v1064_v51 = vld [vmem:[#allocation2 + $0x1f8] sm:$0xff] }
 0x322   :  { %2645 = vmatpush1.bf16.msra.mxu0 %v4179_v9  ;;  %2727 = vmatpush1.bf16.msra.mxu1 %v4181_v11  ;;  %v1028_v9 = vld [vmem:[#allocation2 + $0xd8] sm:$0xff] }
 0x323   :  { %2646 = vmatprep.subr.bf16.mxu0 %v4188_v12  ;;  %2728 = vmatprep.subr.bf16.mxu1 %v4190_v13  ;;  %v1032_v11 = vld [vmem:[#allocation2 + $0xf8] sm:$0xff]  ;;  %v3975_v12 = vcombine.low %v1019_v59, %v1023_v60  ;;  %v3977_v13 = vcombine.low %v1020_v61, %v1024_v62 }
 0x324   :  { %v3986_v6 = vcombine.high %v1028_v9, %v1032_v11  ;;  %v3985_v20 = vcombine.low %v1028_v9, %v1032_v11  ;;  %v1072_v59 = vld [vmem:[#allocation2 + $0x238] sm:$0xff] }
 0x326   :  { %2647 = vmatpush1.bf16.msra.mxu0 %v4187_v17  ;;  %2729 = vmatpush1.bf16.msra.mxu1 %v4189_v18  ;;  %v1040_v17 = vld [vmem:[#allocation2 + $0x138] sm:$0xff]  ;;  %v3983_v18 = vcombine.low %v1027_v7, %v1031_v8 }
 0x327   :  { %2648 = vmatprep.subr.bf16.mxu0 %v4196_v21  ;;  %2730 = vmatprep.subr.bf16.mxu1 %v4198_v22  ;;  %v3992_v21 = vcombine.high %v1035_v10, %v1039_v16  ;;  %v1080_v7 = vld [vmem:[#allocation2 + $0x278] sm:$0xff] }
 0x32a   :  { %2649 = vmatpush1.bf16.msra.mxu0 %v4195_v28  ;;  %2731 = vmatpush1.bf16.msra.mxu1 %v4197_v29  ;;  %v3991_v28 = vcombine.low %v1035_v10, %v1039_v16  ;;  %v1088_v10 = vld [vmem:[#allocation2 + $0x2b8] sm:$0xff] }
 0x32b   :  { %2650 = vmatprep.subr.bf16.mxu0 %v4204_v31  ;;  %2732 = vmatprep.subr.bf16.mxu1 %v4206_v32  ;;  %v4002_v31 = vcombine.high %v1044_v25, %v1048_v26  ;;  %v1051_v32 = vld [vmem:[#allocation2 + $0x190] sm:$0xff] }
 0x32c   :  { %v4007_v52 = vcombine.low %v1051_v32, %v1055_v33 }
 0x32e   :  { %2651 = vmatpush1.bf16.msra.mxu0 %v4203_v46  ;;  %2733 = vmatpush1.bf16.msra.mxu1 %v4205_v47  ;;  %v4008_v46 = vcombine.high %v1051_v32, %v1055_v33  ;;  %v4010_v47 = vcombine.high %v1052_v34, %v1056_v37  ;;  %v1104_v32 = vld [vmem:[#allocation2 + $0x338] sm:$0xff] }
 0x32f   :  { %2743 = vmatprep.subr.bf16.mxu0 %v3960_v49  ;;  %2825 = vmatprep.subr.bf16.mxu1 %v3962_v5  ;;  %v1063_v49 = vld [vmem:[#allocation2 + $0x1f0] sm:$0xff]  ;;  %v1060_v5 = vld [vmem:[#allocation2 + $0x1d8] sm:$0xff] }
 0x330   :  { %v4016_v54 = vcombine.high %v1059_v48, %v1063_v49  ;;  %v4015_v60 = vcombine.low %v1059_v48, %v1063_v49  ;;  %v4017_v61 = vcombine.low %v1060_v5, %v1064_v51  ;;  %v1112_v48 = vld [vmem:[#allocation2 + $0x378] sm:$0xff] }
 0x331   :  { %2653 = vmatmul.mubr.bf16.vlgmr.msra.gmra.mrb[16].mxu0 %v4994_v56  ;;  %2735 = vmatmul.mubr.bf16.vlgmr.msra.gmra.mrb[16].mxu1 %v4994_v56 }
 0x332   :  { %2744 = vmatpush1.bf16.msra.mxu0 %v3959_v55  ;;  %2775 = vmatprep.mubr.bf16.mxu0 %v4977_v1  ;;  %v4018_v55 = vcombine.high %v1060_v5, %v1064_v51 }
 0x333   :  { %2826 = vmatpush1.bf16.msra.mxu1 %v3961_v50  ;;  %2857 = vmatprep.mubr.bf16.mxu1 %v4977_v1  ;;  %v1036_v1 = vld [vmem:[#allocation2 + $0x118] sm:$0xff]  ;;  %v1067_v50 = vld [vmem:[#allocation2 + $0x210] sm:$0xff] }
 0x334   :  { %2745 = vmatprep.subr.bf16.mxu0 %v3968_v57  ;;  %2827 = vmatprep.subr.bf16.mxu1 %v3970_v58  ;;  %v3994_v22 = vcombine.high %v1036_v1, %v1040_v17  ;;  %v3993_v29 = vcombine.low %v1036_v1, %v1040_v17  ;;  %v1071_v57 = vld [vmem:[#allocation2 + $0x230] sm:$0xff]  ;;  %v1068_v58 = vld [vmem:[#allocation2 + $0x218] sm:$0xff] }
 0x335   :  { %v4024_v62 = vcombine.high %v1067_v50, %v1071_v57  ;;  %v4023_v8 = vcombine.low %v1067_v50, %v1071_v57  ;;  %v4025_v9 = vcombine.low %v1068_v58, %v1072_v59  ;;  %v1120_v50 = vld [vmem:[#allocation2 + $0x3b8] sm:$0xff] }
 0x336   :  { %2746 = vmatpush1.bf16.msra.mxu0 %v3967_v63  ;;  %v4026_v63 = vcombine.high %v1068_v58, %v1072_v59 }
 0x337   :  { %2828 = vmatpush1.bf16.msra.mxu1 %v3969_v2  ;;  %2747 = vmatprep.subr.bf16.mxu0 %v3976_v3  ;;  %v1075_v2 = vld [vmem:[#allocation2 + $0x250] sm:$0xff] }
 0x338   :  { %2829 = vmatprep.subr.bf16.mxu1 %v3978_v4  ;;  %v1079_v3 = vld [vmem:[#allocation2 + $0x270] sm:$0xff]  ;;  %v1076_v4 = vld [vmem:[#allocation2 + $0x258] sm:$0xff] }
 0x339   :  { %v4032_v11 = vcombine.high %v1075_v2, %v1079_v3  ;;  %v4031_v16 = vcombine.low %v1075_v2, %v1079_v3  ;;  %v4033_v1 = vcombine.low %v1076_v4, %v1080_v7  ;;  %v1128_v2 = vld [vmem:[#allocation2 + $0x3f8] sm:$0xff] }
 0x33a   :  { %2748 = vmatpush1.bf16.msra.mxu0 %v3975_v12  ;;  %v4034_v12 = vcombine.high %v1076_v4, %v1080_v7 }
 0x33b   :  { %2830 = vmatpush1.bf16.msra.mxu1 %v3977_v13  ;;  %2749 = vmatprep.subr.bf16.mxu0 %v3984_v15  ;;  %v1083_v13 = vld [vmem:[#allocation2 + $0x290] sm:$0xff] }
 0x33c   :  { %2831 = vmatprep.subr.bf16.mxu1 %v3986_v6  ;;  %v1087_v15 = vld [vmem:[#allocation2 + $0x2b0] sm:$0xff]  ;;  %v1084_v6 = vld [vmem:[#allocation2 + $0x298] sm:$0xff] }
 0x33d   :  { %v4040_v17 = vcombine.high %v1083_v13, %v1087_v15  ;;  %v4039_v24 = vcombine.low %v1083_v13, %v1087_v15  ;;  %v4041_v25 = vcombine.low %v1084_v6, %v1088_v10  ;;  %v1136_v13 = vld [vmem:[#allocation2 + $0x438] sm:$0xff] }
 0x33e   :  { %2750 = vmatpush1.bf16.msra.mxu0 %v3983_v18  ;;  %v4042_v18 = vcombine.high %v1084_v6, %v1088_v10 }
 0x33f   :  { %2832 = vmatpush1.bf16.msra.mxu1 %v3985_v20  ;;  %2751 = vmatprep.subr.bf16.mxu0 %v3992_v21  ;;  %v1091_v20 = vld [vmem:[#allocation2 + $0x2d0] sm:$0xff] }
 0x340   :  { %2833 = vmatprep.subr.bf16.mxu1 %v3994_v22  ;;  %v1095_v21 = vld [vmem:[#allocation2 + $0x2f0] sm:$0xff]  ;;  %v1092_v22 = vld [vmem:[#allocation2 + $0x2d8] sm:$0xff] }
 0x341   :  { %v4048_v26 = vcombine.high %v1091_v20, %v1095_v21  ;;  %v4047_v33 = vcombine.low %v1091_v20, %v1095_v21  ;;  %v4049_v34 = vcombine.low %v1092_v22, %v1096_v23  ;;  %v1140_v20 = vld [vmem:[#allocation2 + $0x458] sm:$0xff] }
 0x342   :  { %2752 = vmatpush1.bf16.msra.mxu0 %v3991_v28  ;;  %v4050_v28 = vcombine.high %v1092_v22, %v1096_v23  ;;  %v1144_v21 = vld [vmem:[#allocation2 + $0x478] sm:$0xff] }
 0x343   :  { %2834 = vmatpush1.bf16.msra.mxu1 %v3993_v29  ;;  %2753 = vmatprep.subr.bf16.mxu0 %v4000_v30  ;;  %v1099_v29 = vld [vmem:[#allocation2 + $0x310] sm:$0xff] }
 0x344   :  { %2835 = vmatprep.subr.bf16.mxu1 %v4002_v31  ;;  %v1103_v30 = vld [vmem:[#allocation2 + $0x330] sm:$0xff]  ;;  %v1100_v31 = vld [vmem:[#allocation2 + $0x318] sm:$0xff] }
 0x345   :  { %v4056_v37 = vcombine.high %v1099_v29, %v1103_v30  ;;  %v4055_v49 = vcombine.low %v1099_v29, %v1103_v30  ;;  %v4057_v5 = vcombine.low %v1100_v31, %v1104_v32  ;;  %v1152_v29 = vld [vmem:[#allocation2 + $0x4b8] sm:$0xff] }
 0x346   :  { %2754 = vmatpush1.bf16.msra.mxu0 %v3999_v44  ;;  %v4058_v44 = vcombine.high %v1100_v31, %v1104_v32  ;;  %v4097_v31 = vcombine.low %v1140_v20, %v1144_v21 }
 0x347   :  { %2836 = vmatpush1.bf16.msra.mxu1 %v4001_v45  ;;  %2755 = vmatprep.subr.bf16.mxu0 %v4008_v46  ;;  %v1107_v45 = vld [vmem:[#allocation2 + $0x350] sm:$0xff] }
 0x348   :  { %2837 = vmatprep.subr.bf16.mxu1 %v4010_v47  ;;  %v1111_v46 = vld [vmem:[#allocation2 + $0x370] sm:$0xff]  ;;  %v1108_v47 = vld [vmem:[#allocation2 + $0x358] sm:$0xff] }
 0x349   :  { %v4064_v51 = vcombine.high %v1107_v45, %v1111_v46  ;;  %v4063_v57 = vcombine.low %v1107_v45, %v1111_v46  ;;  %v4065_v58 = vcombine.low %v1108_v47, %v1112_v48  ;;  %v1160_v45 = vld [vmem:[#allocation2 + $0x4f8] sm:$0xff] }
 0x34a   :  { %2756 = vmatpush1.bf16.msra.mxu0 %v4007_v52  ;;  %v4066_v52 = vcombine.high %v1108_v47, %v1112_v48 }
 0x34b   :  { %2838 = vmatpush1.bf16.msra.mxu1 %v4009_v53  ;;  %2757 = vmatprep.subr.bf16.mxu0 %v4016_v54  ;;  %v1115_v53 = vld [vmem:[#allocation2 + $0x390] sm:$0xff] }
 0x34c   :  { %2839 = vmatprep.subr.bf16.mxu1 %v4018_v55  ;;  %v1119_v54 = vld [vmem:[#allocation2 + $0x3b0] sm:$0xff]  ;;  %v1116_v55 = vld [vmem:[#allocation2 + $0x398] sm:$0xff] }
 0x34d   :  { %v4072_v59 = vcombine.high %v1115_v53, %v1119_v54  ;;  %v4071_v3 = vcombine.low %v1115_v53, %v1119_v54  ;;  %v4073_v4 = vcombine.low %v1116_v55, %v1120_v50 }
 0x34e   :  { %2758 = vmatpush1.bf16.msra.mxu0 %v4015_v60  ;;  %v4074_v60 = vcombine.high %v1116_v55, %v1120_v50  ;;  %v1171_v50 = vld [vmem:[#allocation2 + $0x550] sm:$0xff] }
 0x34f   :  { %2840 = vmatpush1.bf16.msra.mxu1 %v4017_v61  ;;  %2759 = vmatprep.subr.bf16.mxu0 %v4024_v62  ;;  %v1123_v61 = vld [vmem:[#allocation2 + $0x3d0] sm:$0xff] }
 0x350   :  { %2841 = vmatprep.subr.bf16.mxu1 %v4026_v63  ;;  %v1127_v62 = vld [vmem:[#allocation2 + $0x3f0] sm:$0xff]  ;;  %v1124_v63 = vld [vmem:[#allocation2 + $0x3d8] sm:$0xff] }
 0x351   :  { %v4080_v7 = vcombine.high %v1123_v61, %v1127_v62  ;;  %v4079_v15 = vcombine.low %v1123_v61, %v1127_v62  ;;  %v4081_v6 = vcombine.low %v1124_v63, %v1128_v2 }
 0x352   :  { %2760 = vmatpush1.bf16.msra.mxu0 %v4023_v8  ;;  %v4082_v8 = vcombine.high %v1124_v63, %v1128_v2  ;;  %v1179_v2 = vld [vmem:[#allocation2 + $0x590] sm:$0xff] }
 0x353   :  { %2842 = vmatpush1.bf16.msra.mxu1 %v4025_v9  ;;  %2761 = vmatprep.subr.bf16.mxu0 %v4032_v11  ;;  %v1131_v9 = vld [vmem:[#allocation2 + $0x410] sm:$0xff] }
 0x354   :  { %2843 = vmatprep.subr.bf16.mxu1 %v4034_v12  ;;  %v1135_v11 = vld [vmem:[#allocation2 + $0x430] sm:$0xff]  ;;  %v1132_v12 = vld [vmem:[#allocation2 + $0x418] sm:$0xff] }
 0x355   :  { %v4088_v10 = vcombine.high %v1131_v9, %v1135_v11  ;;  %v4089_v22 = vcombine.low %v1132_v12, %v1136_v13 }
 0x356   :  { %2762 = vmatpush1.bf16.msra.mxu0 %v4031_v16  ;;  %v4090_v16 = vcombine.high %v1132_v12, %v1136_v13  ;;  %v1187_v13 = vld [vmem:[#allocation2 + $0x5d0] sm:$0xff] }
 0x357   :  { %2844 = vmatpush1.bf16.msra.mxu1 %v4033_v1  ;;  %2763 = vmatprep.subr.bf16.mxu0 %v4040_v17  ;;  %v1139_v1 = vld [vmem:[#allocation2 + $0x450] sm:$0xff] }
 0x358   :  { %2845 = vmatprep.subr.bf16.mxu1 %v4042_v18  ;;  %v1143_v17 = vld [vmem:[#allocation2 + $0x470] sm:$0xff]  ;;  %v4087_v18 = vcombine.low %v1131_v9, %v1135_v11 }
 0x359   :  { %v4096_v23 = vcombine.high %v1139_v1, %v1143_v17  ;;  %v4095_v30 = vcombine.low %v1139_v1, %v1143_v17 }
 0x35a   :  { %2764 = vmatpush1.bf16.msra.mxu0 %v4039_v24  ;;  %v1147_v24 = vld [vmem:[#allocation2 + $0x490] sm:$0xff] }
 0x35b   :  { %2846 = vmatpush1.bf16.msra.mxu1 %v4041_v25  ;;  %2765 = vmatprep.subr.bf16.mxu0 %v4048_v26  ;;  %v1151_v25 = vld [vmem:[#allocation2 + $0x4b0] sm:$0xff]  ;;  %v4098_v26 = vcombine.high %v1140_v20, %v1144_v21 }
 0x35c   :  { %2847 = vmatprep.subr.bf16.mxu1 %v4050_v28  ;;  %v1148_v28 = vld [vmem:[#allocation2 + $0x498] sm:$0xff]  ;;  %v4104_v32 = vcombine.high %v1147_v24, %v1151_v25  ;;  %v4103_v46 = vcombine.low %v1147_v24, %v1151_v25  ;;  %v1195_v20 = vld [vmem:[#allocation2 + $0x610] sm:$0xff] }
 0x35d   :  { %v1199_v21 = vld [vmem:[#allocation2 + $0x630] sm:$0xff] }
 0x35e   :  { %2766 = vmatpush1.bf16.msra.mxu0 %v4047_v33  ;;  %v4106_v33 = vcombine.high %v1148_v28, %v1152_v29 }
 0x35f   :  { %2848 = vmatpush1.bf16.msra.mxu1 %v4049_v34  ;;  %2767 = vmatprep.subr.bf16.mxu0 %v4056_v37  ;;  %v1155_v34 = vld [vmem:[#allocation2 + $0x4d0] sm:$0xff] }
 0x360   :  { %2849 = vmatprep.subr.bf16.mxu1 %v4058_v44  ;;  %v1159_v37 = vld [vmem:[#allocation2 + $0x4f0] sm:$0xff]  ;;  %v1156_v44 = vld [vmem:[#allocation2 + $0x4d8] sm:$0xff] }
 0x361   :  { %v4112_v47 = vcombine.high %v1155_v34, %v1159_v37  ;;  %v4114_v48 = vcombine.high %v1156_v44, %v1160_v45  ;;  %v4113_v53 = vcombine.low %v1156_v44, %v1160_v45  ;;  %v1211_v45 = vld [vmem:[#allocation2 + $0x690] sm:$0xff] }
 0x362   :  { %2768 = vmatpush1.bf16.msra.mxu0 %v4055_v49  ;;  %v1163_v49 = vld [vmem:[#allocation2 + $0x510] sm:$0xff] }
 0x363   :  { %2850 = vmatpush1.bf16.msra.mxu1 %v4057_v5  ;;  %2769 = vmatprep.subr.bf16.mxu0 %v4064_v51  ;;  %v1167_v5 = vld [vmem:[#allocation2 + $0x530] sm:$0xff]  ;;  %v1164_v51 = vld [vmem:[#allocation2 + $0x518] sm:$0xff] }
 0x364   :  { %2851 = vmatprep.subr.bf16.mxu1 %v4066_v52  ;;  %v1168_v52 = vld [vmem:[#allocation2 + $0x538] sm:$0xff]  ;;  %v4120_v54 = vcombine.high %v1163_v49, %v1167_v5 }
 0x365   :  { %v4122_v55 = vcombine.high %v1164_v51, %v1168_v52  ;;  %v4121_v61 = vcombine.low %v1164_v51, %v1168_v52  ;;  %v1219_v52 = vld [vmem:[#allocation2 + $0x6d0] sm:$0xff] }
 0x366   :  { %2770 = vmatpush1.bf16.msra.mxu0 %v4063_v57  ;;  %v1175_v57 = vld [vmem:[#allocation2 + $0x570] sm:$0xff] }
 0x367   :  { %2852 = vmatpush1.bf16.msra.mxu1 %v4065_v58  ;;  %2771 = vmatprep.subr.bf16.mxu0 %v4072_v59  ;;  %v1172_v58 = vld [vmem:[#allocation2 + $0x558] sm:$0xff]  ;;  %v4128_v62 = vcombine.high %v1171_v50, %v1175_v57 }
 0x368   :  { %2853 = vmatprep.subr.bf16.mxu1 %v4074_v60  ;;  %v1176_v59 = vld [vmem:[#allocation2 + $0x578] sm:$0xff]  ;;  %v4119_v60 = vcombine.low %v1163_v49, %v1167_v5 }
 0x369   :  { %v4130_v63 = vcombine.high %v1172_v58, %v1176_v59  ;;  %v4129_v9 = vcombine.low %v1172_v58, %v1176_v59  ;;  %v1227_v59 = vld [vmem:[#allocation2 + $0x710] sm:$0xff] }
 0x36a   :  { %2772 = vmatpush1.bf16.msra.mxu0 %v4071_v3  ;;  %v1183_v3 = vld [vmem:[#allocation2 + $0x5b0] sm:$0xff] }
 0x36b   :  { %2854 = vmatpush1.bf16.msra.mxu1 %v4073_v4  ;;  %2773 = vmatprep.subr.bf16.mxu0 %v4080_v7  ;;  %v1180_v4 = vld [vmem:[#allocation2 + $0x598] sm:$0xff]  ;;  %v4136_v11 = vcombine.high %v1179_v2, %v1183_v3 }
 0x36c   :  { %2855 = vmatprep.subr.bf16.mxu1 %v4082_v8  ;;  %v1184_v7 = vld [vmem:[#allocation2 + $0x5b8] sm:$0xff]  ;;  %v4127_v8 = vcombine.low %v1171_v50, %v1175_v57 }
 0x36d   :  { %v4138_v12 = vcombine.high %v1180_v4, %v1184_v7  ;;  %v4137_v1 = vcombine.low %v1180_v4, %v1184_v7  ;;  %v1235_v7 = vld [vmem:[#allocation2 + $0x750] sm:$0xff] }
 0x36e   :  { %2774 = vmatpush1.bf16.msra.mxu0 %v4079_v15  ;;  %v1191_v15 = vld [vmem:[#allocation2 + $0x5f0] sm:$0xff] }
 0x36f   :  { %2856 = vmatpush1.bf16.msra.mxu1 %v4081_v6  ;;  %2784 = vmatprep.subr.bf16.mxu0 %v4088_v10  ;;  %v1188_v6 = vld [vmem:[#allocation2 + $0x5d8] sm:$0xff]  ;;  %v4144_v17 = vcombine.high %v1187_v13, %v1191_v15  ;;  %v4143_v24 = vcombine.low %v1187_v13, %v1191_v15 }
 0x370   :  { %2866 = vmatprep.subr.bf16.mxu1 %v4090_v16  ;;  %v1192_v10 = vld [vmem:[#allocation2 + $0x5f8] sm:$0xff]  ;;  %v4135_v16 = vcombine.low %v1179_v2, %v1183_v3 }
 0x371   :  { %2776 = vmatmul.mubr.bf16.vlgmr.msra.gmra.mrb[20].mxu0 %v4979_v14  ;;  %v4145_v25 = vcombine.low %v1188_v6, %v1192_v10 }
 0x372   :  { %2858 = vmatmul.mubr.bf16.vlgmr.msra.gmra.mrb[20].mxu1 %v4979_v14  ;;  %2785 = vmatpush1.bf16.msra.mxu0 %v4087_v18  ;;  %v4105_v14 = vcombine.low %v1148_v28, %v1152_v29  ;;  %v4146_v18 = vcombine.high %v1188_v6, %v1192_v10  ;;  %v1203_v29 = vld [vmem:[#allocation2 + $0x650] sm:$0xff] }
 0x373   :  { %2816 = vmatprep.mubr.bf16.mxu0 %v4983_v19  ;;  %2867 = vmatpush1.bf16.msra.mxu1 %v4089_v22  ;;  %v1196_v22 = vld [vmem:[#allocation2 + $0x618] sm:$0xff]  ;;  %v1243_v10 = vld [vmem:[#allocation2 + $0x790] sm:$0xff] }
 0x374   :  { %2898 = vmatprep.mubr.bf16.mxu1 %v4983_v19  ;;  %2786 = vmatprep.subr.bf16.mxu0 %v4096_v23  ;;  %v4111_v19 = vcombine.low %v1155_v34, %v1159_v37  ;;  %v1200_v23 = vld [vmem:[#allocation2 + $0x638] sm:$0xff] }
 0x375   :  { %2868 = vmatprep.subr.bf16.mxu1 %v4098_v26  ;;  %v4152_v26 = vcombine.high %v1195_v20, %v1199_v21  ;;  %v4154_v28 = vcombine.high %v1196_v22, %v1200_v23  ;;  %v4153_v34 = vcombine.low %v1196_v22, %v1200_v23  ;;  %v1251_v23 = vld [vmem:[#allocation2 + $0x7d0] sm:$0xff] }
 0x376   :  { %2787 = vmatpush1.bf16.msra.mxu0 %v4095_v30  ;;  %v1207_v30 = vld [vmem:[#allocation2 + $0x670] sm:$0xff] }
 0x377   :  { %2869 = vmatpush1.bf16.msra.mxu1 %v4097_v31  ;;  %2788 = vmatprep.subr.bf16.mxu0 %v4104_v32  ;;  %v1204_v31 = vld [vmem:[#allocation2 + $0x658] sm:$0xff]  ;;  %v4160_v37 = vcombine.high %v1203_v29, %v1207_v30 }
 0x378   :  { %2870 = vmatprep.subr.bf16.mxu1 %v4106_v33  ;;  %v1208_v32 = vld [vmem:[#allocation2 + $0x678] sm:$0xff]  ;;  %v4151_v33 = vcombine.low %v1195_v20, %v1199_v21 }
 0x379   :  { %v4162_v44 = vcombine.high %v1204_v31, %v1208_v32  ;;  %v4161_v49 = vcombine.low %v1204_v31, %v1208_v32 }
 0x37a   :  { %2789 = vmatpush1.bf16.msra.mxu0 %v4103_v46  ;;  %v1215_v46 = vld [vmem:[#allocation2 + $0x6b0] sm:$0xff] }
 0x37b   :  { %2871 = vmatpush1.bf16.msra.mxu1 %v4105_v14  ;;  %2790 = vmatprep.subr.bf16.mxu0 %v4112_v47  ;;  %v1212_v14 = vld [vmem:[#allocation2 + $0x698] sm:$0xff]  ;;  %v4168_v5 = vcombine.high %v1211_v45, %v1215_v46 }
 0x37c   :  { %2872 = vmatprep.subr.bf16.mxu1 %v4114_v48  ;;  %v1216_v47 = vld [vmem:[#allocation2 + $0x6b8] sm:$0xff]  ;;  %v4159_v48 = vcombine.low %v1203_v29, %v1207_v30 }
 0x37d   :  { %v4170_v51 = vcombine.high %v1212_v14, %v1216_v47  ;;  %v4169_v50 = vcombine.low %v1212_v14, %v1216_v47  ;;  %v4498_v14 = vld [vmem:[%s5330_s7 + $0xc8] sm:$0xff]  }
 0x37e   :  { %2791 = vmatpush1.bf16.msra.mxu0 %v4111_v19  ;;  %v1223_v19 = vld [vmem:[#allocation2 + $0x6f0] sm:$0xff]  ;;  %v4499_v47 = vld [vmem:[%s5330_s7 + $0x8] sm:$0xff]  }
 0x37f   :  { %2873 = vmatpush1.bf16.msra.mxu1 %v4113_v53  ;;  %2792 = vmatprep.subr.bf16.mxu0 %v4120_v54  ;;  %v1220_v53 = vld [vmem:[#allocation2 + $0x6d8] sm:$0xff]  ;;  %v4176_v57 = vcombine.high %v1219_v52, %v1223_v19 }
 0x380   :  { %2874 = vmatprep.subr.bf16.mxu1 %v4122_v55  ;;  %v1224_v54 = vld [vmem:[#allocation2 + $0x6f8] sm:$0xff]  ;;  %v4167_v55 = vcombine.low %v1211_v45, %v1215_v46  ;;  %v4496_v45 = vld [vmem:[%s5330_s7 + $0x80] sm:$0xff]   ;;  %v4497_v46 = vld [vmem:[%s5330_s7 + $0x48] sm:$0xff]  }
 0x381   :  { %v4178_v58 = vcombine.high %v1220_v53, %v1224_v54  ;;  %v4177_v2 = vcombine.low %v1220_v53, %v1224_v54 }
 0x382   :  { %2793 = vmatpush1.bf16.msra.mxu0 %v4119_v60  ;;  %v1231_v60 = vld [vmem:[#allocation2 + $0x730] sm:$0xff] }
 0x383   :  { %2875 = vmatpush1.bf16.msra.mxu1 %v4121_v61  ;;  %2794 = vmatprep.subr.bf16.mxu0 %v4128_v62  ;;  %v1228_v61 = vld [vmem:[#allocation2 + $0x718] sm:$0xff]  ;;  %v4184_v3 = vcombine.high %v1227_v59, %v1231_v60 }
 0x384   :  { %2876 = vmatprep.subr.bf16.mxu1 %v4130_v63  ;;  %v1232_v62 = vld [vmem:[#allocation2 + $0x738] sm:$0xff]  ;;  %v4175_v63 = vcombine.low %v1219_v52, %v1223_v19 }
 0x385   :  { %v4186_v4 = vcombine.high %v1228_v61, %v1232_v62  ;;  %v4185_v13 = vcombine.low %v1228_v61, %v1232_v62  ;;  %v4507_v61 = vld [vmem:[%s5330_s7 + $0x18] sm:$0xff]  }
 0x386   :  { %2795 = vmatpush1.bf16.msra.mxu0 %v4127_v8  ;;  %v1239_v8 = vld [vmem:[#allocation2 + $0x770] sm:$0xff]  ;;  %v4508_v62 = vld [vmem:[%s5330_s7 + $0x98] sm:$0xff]  }
 0x387   :  { %2877 = vmatpush1.bf16.msra.mxu1 %v4129_v9  ;;  %2796 = vmatprep.subr.bf16.mxu0 %v4136_v11  ;;  %v1236_v9 = vld [vmem:[#allocation2 + $0x758] sm:$0xff]  ;;  %v4192_v15 = vcombine.high %v1235_v7, %v1239_v8 }
 0x388   :  { %2878 = vmatprep.subr.bf16.mxu1 %v4138_v12  ;;  %v1240_v11 = vld [vmem:[#allocation2 + $0x778] sm:$0xff]  ;;  %v4183_v12 = vcombine.low %v1227_v59, %v1231_v60 }
 0x389   :  { %v4194_v6 = vcombine.high %v1236_v9, %v1240_v11  ;;  %v4193_v20 = vcombine.low %v1236_v9, %v1240_v11  ;;  %v4505_v59 = vld [vmem:[%s5330_s7 + $0x58] sm:$0xff]   ;;  %v4515_v9 = vld [vmem:[%s5330_s7 + $0x28] sm:$0xff]  }
 0x38a   :  { %2797 = vmatpush1.bf16.msra.mxu0 %v4135_v16  ;;  %v1247_v16 = vld [vmem:[#allocation2 + $0x7b0] sm:$0xff]  ;;  %v4506_v60 = vld [vmem:[%s5330_s7 + $0xd8] sm:$0xff]   ;;  %v4516_v11 = vld [vmem:[%s5330_s7 + $0xa8] sm:$0xff]  }
 0x38b   :  { %2879 = vmatpush1.bf16.msra.mxu1 %v4137_v1  ;;  %2798 = vmatprep.subr.bf16.mxu0 %v4144_v17  ;;  %v1244_v1 = vld [vmem:[#allocation2 + $0x798] sm:$0xff]  ;;  %v4200_v21 = vcombine.high %v1243_v10, %v1247_v16 }
 0x38c   :  { %2880 = vmatprep.subr.bf16.mxu1 %v4146_v18  ;;  %v1248_v17 = vld [vmem:[#allocation2 + $0x7b8] sm:$0xff]  ;;  %v4191_v18 = vcombine.low %v1235_v7, %v1239_v8  ;;  %v4513_v7 = vld [vmem:[%s5330_s7 + $0x68] sm:$0xff]  }
 0x38d   :  { %v4202_v22 = vcombine.high %v1244_v1, %v1248_v17  ;;  %v4201_v29 = vcombine.low %v1244_v1, %v1248_v17  ;;  %v4514_v8 = vld [vmem:[%s5330_s7 + $0xe8] sm:$0xff]   ;;  %v4523_v1 = vld [vmem:[%s5330_s7 + $0x38] sm:$0xff]  }
 0x38e   :  { %2799 = vmatpush1.bf16.msra.mxu0 %v4143_v24  ;;  %v1255_v24 = vld [vmem:[#allocation2 + $0x7f0] sm:$0xff]  ;;  %v4524_v17 = vld [vmem:[%s5330_s7 + $0xb8] sm:$0xff]  }
 0x38f   :  { %2881 = vmatpush1.bf16.msra.mxu1 %v4145_v25  ;;  %2800 = vmatprep.subr.bf16.mxu0 %v4152_v26  ;;  %v1252_v25 = vld [vmem:[#allocation2 + $0x7d8] sm:$0xff]  ;;  %v4208_v30 = vcombine.high %v1251_v23, %v1255_v24  ;;  %v4207_v32 = vcombine.low %v1251_v23, %v1255_v24 }
 0x390   :  { %2882 = vmatprep.subr.bf16.mxu1 %v4154_v28  ;;  %v1256_v26 = vld [vmem:[#allocation2 + $0x7f8] sm:$0xff]  ;;  %v4199_v28 = vcombine.low %v1243_v10, %v1247_v16 }
 0x391   :  { %v4210_v31 = vcombine.high %v1252_v25, %v1256_v26  ;;  %v4521_v10 = vld [vmem:[%s5330_s7 + $0x78] sm:$0xff]  }
 0x392   :  { %2801 = vmatpush1.bf16.msra.mxu0 %v4151_v33  ;;  %v4209_v33 = vcombine.low %v1252_v25, %v1256_v26  ;;  %v4522_v16 = vld [vmem:[%s5330_s7 + $0xf8] sm:$0xff]  }
 0x393   :  { %2883 = vmatpush1.bf16.msra.mxu1 %v4153_v34  ;;  %2802 = vmatprep.subr.bf16.mxu0 %v4160_v37  ;;  %v4493_v34 = vld [vmem:[%s5330_s7 + $0x40] sm:$0xff]  }
 0x394   :  { %2884 = vmatprep.subr.bf16.mxu1 %v4162_v44  ;;  %v4494_v37 = vld [vmem:[%s5330_s7 + $0xc0] sm:$0xff]  }
 0x395   :  { %v4495_v44 = vld [vmem:[%s5330_s7] sm:$0xff]  }
 0x396   :  { %2803 = vmatpush1.bf16.msra.mxu0 %v4159_v48  ;;  %v4500_v48 = vld [vmem:[%s5330_s7 + $0x88] sm:$0xff]  }
 0x397   :  { %2885 = vmatpush1.bf16.msra.mxu1 %v4161_v49  ;;  %2804 = vmatprep.subr.bf16.mxu0 %v4168_v5 }
 0x398   :  { %2886 = vmatprep.subr.bf16.mxu1 %v4170_v51 }
 0x39a   :  { %2805 = vmatpush1.bf16.msra.mxu0 %v4167_v55  ;;  %v4501_v55 = vld [vmem:[%s5330_s7 + $0x50] sm:$0xff]  }
 0x39b   :  { %2887 = vmatpush1.bf16.msra.mxu1 %v4169_v50  ;;  %2806 = vmatprep.subr.bf16.mxu0 %v4176_v57  ;;  %v4502_v50 = vld [vmem:[%s5330_s7 + $0xd0] sm:$0xff]  }
 0x39c   :  { %2888 = vmatprep.subr.bf16.mxu1 %v4178_v58  ;;  %v4503_v57 = vld [vmem:[%s5330_s7 + $0x10] sm:$0xff]  }
 0x39d   :  { %v4504_v58 = vld [vmem:[%s5330_s7 + $0x90] sm:$0xff]  }
 0x39e   :  { %2807 = vmatpush1.bf16.msra.mxu0 %v4175_v63  ;;  %v4509_v63 = vld [vmem:[%s5330_s7 + $0x60] sm:$0xff]  }
 0x39f   :  { %2889 = vmatpush1.bf16.msra.mxu1 %v4177_v2  ;;  %2808 = vmatprep.subr.bf16.mxu0 %v4184_v3  ;;  %v4510_v2 = vld [vmem:[%s5330_s7 + $0xe0] sm:$0xff]  }
 0x3a0   :  { %2890 = vmatprep.subr.bf16.mxu1 %v4186_v4  ;;  %v4511_v3 = vld [vmem:[%s5330_s7 + $0x20] sm:$0xff]  }
 0x3a1   :  { %v4512_v4 = vld [vmem:[%s5330_s7 + $0xa0] sm:$0xff]  }
 0x3a2   :  { %2809 = vmatpush1.bf16.msra.mxu0 %v4183_v12  ;;  %v4517_v12 = vld [vmem:[%s5330_s7 + $0x70] sm:$0xff]  }
 0x3a3   :  { %2891 = vmatpush1.bf16.msra.mxu1 %v4185_v13  ;;  %2810 = vmatprep.subr.bf16.mxu0 %v4192_v15  ;;  %v4518_v13 = vld [vmem:[%s5330_s7 + $0xf0] sm:$0xff]  }
 0x3a4   :  { %2892 = vmatprep.subr.bf16.mxu1 %v4194_v6  ;;  %v4519_v15 = vld [vmem:[%s5330_s7 + $0x30] sm:$0xff]  }
 0x3a5   :  { %v4520_v6 = vld [vmem:[%s5330_s7 + $0xb0] sm:$0xff]  }
 0x3a6   :  { %2811 = vmatpush1.bf16.msra.mxu0 %v4191_v18  ;;  %v1257_v18 = vld [vmem:[%s5329_s6] sm:$0xff] }
 0x3a7   :  { %2893 = vmatpush1.bf16.msra.mxu1 %v4193_v20  ;;  %2812 = vmatprep.subr.bf16.mxu0 %v4200_v21  ;;  %v1262_v20 = vrot.slane %v1257_v18, %v4883_v35  ;;  %v1278_v21 = vrot.slane %v1257_v18, %v96_v36  ;;  %v1266_v23 = vrot.slane %v1257_v18, %v4891_v39 }
 0x3a8   :  { %2894 = vmatprep.subr.bf16.mxu1 %v4202_v22  ;;  %v1270_v22 = vrot.slane %v1257_v18, %v88_v38  ;;  %v1286_v24 = vrot.slane %v1257_v18, %v104_v40  ;;  %v1282_v25 = vrot.slane %v1257_v18, %v100_v41  ;;  %v1274_v26 = vrot.slane %v1257_v18, %v92_v42 }
 0x3aa   :  { %2813 = vmatpush1.bf16.msra.mxu0 %v4199_v28  ;;  %v1290_v28 = vrot.slane %v1257_v18, %v108_v43 }
 0x3ab   :  { %2895 = vmatpush1.bf16.msra.mxu1 %v4201_v29  ;;  %2814 = vmatprep.subr.bf16.mxu0 %v4208_v30 }
 0x3ac   :  { %2896 = vmatprep.subr.bf16.mxu1 %v4210_v31 }
 0x3ae   :  { %2815 = vmatpush1.bf16.msra.mxu0 %v4207_v32 }
 0x3af   :  { %2897 = vmatpush1.bf16.msra.mxu1 %v4209_v33  ;;  %4330 = vmatprep.subr.bf16.mxu0 %v4493_v34 }
 0x3b0   :  { %4352 = vmatprep.subr.bf16.mxu1 %v4494_v37 }
 0x3b1   :  { %2817 = vmatmul.mubr.bf16.vlgmr.msra.gmra.mrb[20].mxu0 %v4994_v56 }
 0x3b2   :  { %2899 = vmatmul.mubr.bf16.vlgmr.msra.gmra.mrb[20].mxu1 %v4994_v56  ;;  %4331 = vmatpush3.bf16.msra.mxu0 %v4495_v44 }
 0x3b3   :  { %4353 = vmatpush3.bf16.msra.mxu1 %v4496_v45  ;;  %4332 = vmatprep.subr.bf16.mxu0 %v4497_v46 }
 0x3b4   :  { %4354 = vmatprep.subr.bf16.mxu1 %v4498_v14 }
 0x3b6   :  { %4333 = vmatpush3.bf16.msra.mxu0 %v4499_v47 }
 0x3b7   :  { %4355 = vmatpush3.bf16.msra.mxu1 %v4500_v48  ;;  %4334 = vmatprep.subr.bf16.mxu0 %v4501_v55 }
 0x3b8   :  { %4356 = vmatprep.subr.bf16.mxu1 %v4502_v50 }
 0x3ba   :  { %4335 = vmatpush3.bf16.msra.mxu0 %v4503_v57 }
 0x3bb   :  { %4357 = vmatpush3.bf16.msra.mxu1 %v4504_v58  ;;  %4336 = vmatprep.subr.bf16.mxu0 %v4505_v59 }
 0x3bc   :  { %4358 = vmatprep.subr.bf16.mxu1 %v4506_v60 }
 0x3be   :  { %4337 = vmatpush3.bf16.msra.mxu0 %v4507_v61 }
 0x3bf   :  { %4359 = vmatpush3.bf16.msra.mxu1 %v4508_v62  ;;  %4338 = vmatprep.subr.bf16.mxu0 %v4509_v63 }
 0x3c0   :  { %4360 = vmatprep.subr.bf16.mxu1 %v4510_v2 }
 0x3c2   :  { %4339 = vmatpush3.bf16.msra.mxu0 %v4511_v3 }
 0x3c3   :  { %4361 = vmatpush3.bf16.msra.mxu1 %v4512_v4  ;;  %4340 = vmatprep.subr.bf16.mxu0 %v4513_v7 }
 0x3c4   :  { %4362 = vmatprep.subr.bf16.mxu1 %v4514_v8 }
 0x3c6   :  { %4341 = vmatpush3.bf16.msra.mxu0 %v4515_v9 }
 0x3c7   :  { %4363 = vmatpush3.bf16.msra.mxu1 %v4516_v11  ;;  %4342 = vmatprep.subr.bf16.mxu0 %v4517_v12 }
 0x3c8   :  { %4364 = vmatprep.subr.bf16.mxu1 %v4518_v13 }
 0x3ca   :  { %4343 = vmatpush3.bf16.msra.mxu0 %v4519_v15 }
 0x3cb   :  { %4365 = vmatpush3.bf16.msra.mxu1 %v4520_v6  ;;  %4344 = vmatprep.subr.bf16.mxu0 %v4521_v10 }
 0x3cc   :  { %4366 = vmatprep.subr.bf16.mxu1 %v4522_v16 }
 0x3ce   :  { %4345 = vmatpush3.bf16.msra.mxu0 %v4523_v1 }
 0x3cf   :  { %4367 = vmatpush3.bf16.msra.mxu1 %v4524_v17 }
 0x404   :  { %v5030_v49 = vpop.f32.mrb[16].mxu0  ;;  %v5032_v5 = vpop.f32.mrb[16].mxu1 }
 0x405   :  { %v5034_v51 = vpop.f32.mrb[17].mxu0  ;;  %v5036_v56 = vpop.f32.mrb[17].mxu1  ;;  %v4418_v36 = vadd.f32 %v5030_v49, %v1262_v20  ;;  %v4420_v32 = vadd.f32 %v5032_v5, %v1270_v22 }
 0x406   :  { %v2658_v52 = vpop.f32.mrb[18].mxu0  ;;  %v2740_v19 = vpop.f32.mrb[18].mxu1  ;;  %v4419_v33 = vadd.f32 %v5034_v51, %v1266_v23  ;;  %v4421_v44 = vadd.f32 %v5036_v56, %v1274_v26 }
 0x407   :  { %v2659_v53 = vpop.f32.mrb[19].mxu0  ;;  %v2741_v54 = vpop.f32.mrb[19].mxu1 }
 0x484   :  { %v2818_v29 = vpop.f32.mrb[20].mxu0 }
 0x485   :  { %v4422_v30 = vadd.f32 %v2818_v29, %v1278_v21  ;;  %v2900_v31 = vpop.f32.mrb[20].mxu1  ;;  %v2820_v38 = vpop.f32.mrb[21].mxu0 }
 0x486   :  { %v4424_v40 = vadd.f32 %v2900_v31, %v1286_v24  ;;  %v4423_v34 = vadd.f32 %v2820_v38, %v1282_v25  ;;  %v2902_v37 = vpop.f32.mrb[21].mxu1  ;;  %v2822_v41 = vpop.f32.mrb[22].mxu0 }
 0x487   :  { %v5131_v42 = vmax.f32 %v4418_v36, %v4422_v30  ;;  %v4425_v45 = vadd.f32 %v2902_v37, %v1290_v28  ;;  %v2904_v43 = vpop.f32.mrb[22].mxu1  ;;  %v2823_v46 = vpop.f32.mrb[23].mxu0 }
 0x488   :  { %v5133_v14 = vmax.f32 %v4420_v32, %v4424_v40  ;;  %v5135_v47 = vmax.f32 %v4419_v33, %v4423_v34  ;;  %v2905_v48 = vpop.f32.mrb[23].mxu1 }
 0x489   :  { %v2911_v49 = vsel %vm417_vm2, %v5131_v42, 0.0  ;;  %v2939_v5 = vmul.f32 %v5131_v42, %v5131_v42  ;;  %v5141_v51 = vmax.f32 %v4421_v44, %v4425_v45 }
 0x48a   :  { %v2912_v52 = vrot.slane %v2911_v49, 4  ;;  %v2925_v56 = vsel %vm417_vm2, %v5133_v14, 0.0  ;;  %v2941_v19 = vmul.f32 %v5133_v14, %v5133_v14  ;;  %v2918_v53 = vsel %vm417_vm2, %v5135_v47, 0.0 }
 0x48b   :  { %v2943_v54 = vsel %vm417_vm2, %v2939_v5, 0.0  ;;  %v2926_v55 = vrot.slane %v2925_v56, 4  ;;  %v2919_v50 = vrot.slane %v2918_v53, 4  ;;  %v2940_v57 = vmul.f32 %v5135_v47, %v5135_v47 }
 0x48c   :  { %v2913_v58 = vadd.f32 %v2912_v52, %v2911_v49  ;;  %v2944_v59 = vrot.slane %v2943_v54, 4  ;;  %v2957_v60 = vsel %vm417_vm2, %v2941_v19, 0.0  ;;  %v2932_v61 = vsel %vm417_vm2, %v5141_v51, 0.0 }
 0x48d   :  { %v2927_v62 = vadd.f32 %v2926_v55, %v2925_v56  ;;  %v2958_v63 = vrot.slane %v2957_v60, 4  ;;  %v2920_v2 = vadd.f32 %v2919_v50, %v2918_v53  ;;  %v2950_v3 = vsel %vm417_vm2, %v2940_v57, 0.0 }
 0x48e   :  { %v2914_v4 = vrot.slane %v2913_v58, 2  ;;  %v2945_v7 = vadd.f32 %v2944_v59, %v2943_v54  ;;  %v2951_v8 = vrot.slane %v2950_v3, 4  ;;  %v2933_v9 = vrot.slane %v2932_v61, 4 }
 0x48f   :  { %v2928_v11 = vrot.slane %v2927_v62, 2  ;;  %v2959_v12 = vadd.f32 %v2958_v63, %v2957_v60  ;;  %v2921_v13 = vrot.slane %v2920_v2, 2  ;;  %v2942_v15 = vmul.f32 %v5141_v51, %v5141_v51  ;;  %v4527_v60 = vld [vmem:[%s5331_s8 + $0x4] ss:$16 sps:$4 sm:$0xff]   ;;  %v4528_v63 = vld [vmem:[%s5331_s8 + $0x8] ss:$16 sps:$4 sm:$0xff]  }
 0x490   :  { %v2915_v6 = vadd.f32 %v2914_v4, %v2913_v58  ;;  %v2946_v10 = vrot.slane %v2945_v7, 2  ;;  %v2952_v16 = vadd.f32 %v2951_v8, %v2950_v3  ;;  %v2934_v1 = vadd.f32 %v2933_v9, %v2932_v61  ;;  %v4530_v61 = vld [vmem:[%s5331_s8 + $0xc] ss:$16 sps:$4 sm:$0xff]   ;;  %3389 = vmatprep.subr.bf16.mxu0 %v4527_v60  ;;  %v4531_v3 = vld [vmem:[%s5331_s8 + $0x20] ss:$16 sps:$4 sm:$0xff]  }
 0x491   :  { %v2960_v17 = vrot.slane %v2959_v12, 2  ;;  %v2922_v18 = vadd.f32 %v2921_v13, %v2920_v2  ;;  %v2964_v20 = vsel %vm417_vm2, %v2942_v15, 0.0  ;;  %v2929_v29 = vadd.f32 %v2928_v11, %v2927_v62  ;;  %v4525_v62 = vld [vmem:[%s5331_s8] ss:$16 sps:$4 sm:$0xff]   ;;  %3430 = vmatprep.subr.bf16.mxu1 %v4530_v61  ;;  %v4536_v2 = vld [vmem:[%s5331_s8 + $0x2c] ss:$16 sps:$4 sm:$0xff]  }
 0x492   :  { %v2947_v21 = vadd.f32 %v2946_v10, %v2945_v7  ;;  %v2953_v22 = vrot.slane %v2952_v16, 2  ;;  %v2935_v23 = vrot.slane %v2934_v1, 2  ;;  %v2916_v24 = vrot.slane %v2915_v6, 1  ;;  %v4534_v4 = vld [vmem:[%s5331_s8 + $0x28] ss:$16 sps:$4 sm:$0xff]   ;;  %v4537_v7 = vld [vmem:[%s5332_s9 + $0x40] sm:$0xff]  }
 0x493   :  { %v2961_v25 = vadd.f32 %v2960_v17, %v2959_v12  ;;  %v2965_v26 = vrot.slane %v2964_v20, 4  ;;  %v2923_v36 = vrot.slane %v2922_v18, 1  ;;  %v2930_v41 = vrot.slane %v2929_v29, 1  ;;  %v4538_v8 = vld [vmem:[%s5332_s9 + $0xc0] sm:$0xff]   ;;  %v4564_v60 = vld [vmem:[%s5332_s9 + $0xb0] sm:$0xff]   ;;  %v4565_v61 = vld [vmem:[%s5332_s9 + $0x78] sm:$0xff]  }
 0x494   :  { %v2948_v28 = vrot.slane %v2947_v21, 1  ;;  %v2954_v30 = vadd.f32 %v2953_v22, %v2952_v16  ;;  %v2936_v31 = vadd.f32 %v2935_v23, %v2934_v1  ;;  %v2917_v34 = vadd.f32 %v2916_v24, %v2915_v6 }
 0x495   :  { %v2966_v38 = vadd.f32 %v2965_v26, %v2964_v20  ;;  %v2962_v32 = vrot.slane %v2961_v25, 1  ;;  %v2924_v44 = vadd.f32 %v2923_v36, %v2922_v18  ;;  %v2931_v19 = vadd.f32 %v2930_v41, %v2929_v29  ;;  %v4546_v41 = vld [vmem:[%s5332_s9 + $0xd0] sm:$0xff]  }
 0x496   :  { %v2955_v33 = vrot.slane %v2954_v30, 1  ;;  %v2949_v40 = vadd.f32 %v2948_v28, %v2947_v21  ;;  %v2937_v43 = vrot.slane %v2936_v31, 1 }
 0x497   :  { %v2967_v37 = vrot.slane %v2966_v38, 2  ;;  %v2963_v5 = vadd.f32 %v2962_v32, %v2961_v25 }
 0x498   :  { %v2956_v45 = vadd.f32 %v2955_v33, %v2954_v30  ;;  %v2971_v48 = vsel %vm480_vm3, %v2917_v34, %v2949_v40  ;;  %v2938_v54 = vadd.f32 %v2937_v43, %v2936_v31  ;;  %v4539_v31 = vld [vmem:[%s5332_s9] sm:$0xff]   ;;  %v4541_v33 = vld [vmem:[%s5332_s9 + $0x48] sm:$0xff]   ;;  %v4549_v43 = vld [vmem:[%s5332_s9 + $0x58] sm:$0xff]  }
 0x499   :  { %v2968_v46 = vadd.f32 %v2967_v37, %v2966_v38  ;;  %v2975_v53 = vpack.c.bf16 %v2971_v48, %v2971_v48  ;;  %v2973_v50 = vsel %vm480_vm3, %v2931_v19, %v2963_v5  ;;  %v4540_v38 = vld [vmem:[%s5332_s9 + $0x80] sm:$0xff]   ;;  %v4542_v40 = vld [vmem:[%s5332_s9 + $0xc8] sm:$0xff]   ;;  %v4545_v37 = vld [vmem:[%s5332_s9 + $0x50] sm:$0xff]  }
 0x49a   :  { %v2972_v49 = vsel %vm480_vm3, %v2924_v44, %v2956_v45  ;;  %v2977_v59 = vpack.c.bf16 %v2973_v50, %v2973_v50  ;;  %v4544_v34 = vld [vmem:[%s5332_s9 + $0x88] sm:$0xff]   ;;  %v4547_v44 = vld [vmem:[%s5332_s9 + $0x10] sm:$0xff]   ;;  %v4551_v48 = vld [vmem:[%s5332_s9 + $0x18] sm:$0xff]  }
 0x49b   :  { %v2976_v52 = vpack.c.bf16 %v2972_v49, %v2972_v49  ;;  %v2969_v56 = vrot.slane %v2968_v46, 1  ;;  %v4548_v45 = vld [vmem:[%s5332_s9 + $0x90] sm:$0xff]   ;;  %v4552_v49 = vld [vmem:[%s5332_s9 + $0x98] sm:$0xff]   ;;  %v4553_v5 = vld [vmem:[%s5332_s9 + $0x60] sm:$0xff]  }
 0x49c   :  { %v4556_v19 = vld [vmem:[%s5332_s9 + $0xa0] sm:$0xff]   ;;  %v4560_v50 = vld [vmem:[%s5332_s9 + $0xa8] sm:$0xff]  }
 0x49d   :  { %3267 = vmatprep.mubr.bf16.mxu0 %v2976_v52  ;;  %v2970_v55 = vadd.f32 %v2969_v56, %v2968_v46  ;;  %v4550_v46 = vld [vmem:[%s5332_s9 + $0xd8] sm:$0xff]   ;;  %v4554_v52 = vld [vmem:[%s5332_s9 + $0xe0] sm:$0xff]  }
 0x49e   :  { %3268 = vmatmul.mubr.bf16.vlgmr.msra.gmra.mrb[24].mxu0 %v2975_v53  ;;  %v4555_v56 = vld [vmem:[%s5332_s9 + $0x20] sm:$0xff]   ;;  %v4557_v53 = vld [vmem:[%s5332_s9 + $0x68] sm:$0xff]  }
 0x49f   :  { %v2974_v57 = vsel %vm480_vm3, %v2938_v54, %v2970_v55  ;;  %3421 = vmatprep.mubr.bf16.mxu0 %v4628_v0  ;;  %3390 = vmatpush1.bf16.msra.mxu0 %v4525_v62  ;;  %v4558_v54 = vld [vmem:[%s5332_s9 + $0xe8] sm:$0xff]   ;;  %v4566_v62 = vld [vmem:[%s5332_s9 + $0xf8] sm:$0xff]  }
 0x4a0   :  { %v2978_v58 = vpack.c.bf16 %v2974_v57, %v2974_v57  ;;  %v4559_v55 = vld [vmem:[%s5332_s9 + $0x28] sm:$0xff]   ;;  %v4561_v57 = vld [vmem:[%s5332_s9 + $0x70] sm:$0xff]  }
 0x4a2   :  { %3307 = vmatprep.mubr.bf16.mxu1 %v2978_v58  ;;  %v4562_v58 = vld [vmem:[%s5332_s9 + $0xf0] sm:$0xff]  }
 0x4a3   :  { %3308 = vmatmul.mubr.bf16.vlgmr.msra.gmra.mrb[24].mxu1 %v2977_v59  ;;  %v4563_v59 = vld [vmem:[%s5332_s9 + $0x30] sm:$0xff]  }
 0x4a4   :  { %3462 = vmatprep.mubr.bf16.mxu1 %v4628_v0  ;;  %3431 = vmatpush1.bf16.msra.mxu1 %v4528_v63  ;;  %v4533_v0 = vld [vmem:[%s5331_s8 + $0x24] ss:$16 sps:$4 sm:$0xff]   ;;  %v4567_v63 = vld [vmem:[%s5332_s9 + $0x38] sm:$0xff]  }
 0x4a5   :  { %3391 = vmatprep.subr.bf16.mxu0 %v4533_v0  ;;  %3432 = vmatprep.subr.bf16.mxu1 %v4536_v2  ;;  %v4568_v0 = vld [vmem:[%s5332_s9 + $0xb8] sm:$0xff]  }
 0x4a6   :  { %3392 = vmatpush1.bf16.msra.mxu0 %v4531_v3 }
 0x4a7   :  { %4374 = vmatprep.subr.bf16.mxu0 %v4537_v7 }
 0x4a8   :  { %3433 = vmatpush1.bf16.msra.mxu1 %v4534_v4 }
 0x4a9   :  { %4396 = vmatprep.subr.bf16.mxu1 %v4538_v8 }
 0x571   :  { %v4346_v9 = vpop.f32.mrb[24].mxu0 }
 0x572   :  { %v4347_v11 = vpop.f32.mrb[25].mxu0 }
 0x573   :  { %v4348_v12 = vadd.f32 %v4347_v11, %v4346_v9  ;;  %v4349_v13 = vpop.f32.mrb[26].mxu0 }
 0x574   :  { %v4350_v15 = vpop.f32.mrb[27].mxu0 }
 0x576   :  { %v4368_v6 = vpop.f32.mrb[24].mxu1 }
 0x577   :  { %v4369_v10 = vpop.f32.mrb[25].mxu1 }
 0x578   :  { %v4370_v16 = vadd.f32 %v4369_v10, %v4368_v6  ;;  %v4371_v1 = vpop.f32.mrb[26].mxu1 }
 0x579   :  { %v4372_v17 = vpop.f32.mrb[27].mxu1 }
 0x57a   :  { %v3310_v18 = vadd.f32 %v4370_v16, %v4348_v12 }
 0x57c   :  { %v3315_v20 = vmul.f32 %v3310_v18, %v3310_v18  ;;  %v3322_v25 = vsub.f32 0.0, %v3310_v18 }
 0x57e   :  { %v3317_v21 = vrot.slane %v3315_v20, 7 }
 0x580   :  { %v3319_v22 = vsub.f32 %v3310_v18, %v3317_v21 }
 0x582   :  { %v3320_v23 = vadd.f32 16.0, %v3319_v22 }
 0x584   :  { %4571 = vrsqrt.f32 %v3320_v23 }
 0x58e   :  { %v4572_v24 = vpop.eup %4571 }
 0x58f   :  { %v3324_v26 = vrot.slane %v4572_v24, 1  ;;  %v3330_v36 = vrot.slane %v4572_v24, %v4891_v39 }
 0x591   :  { %v3326_v28 = vmul.f32 %v3324_v26, %v3322_v25 }
 0x593   :  { %v3334_v29 = vrot.slane %v3326_v28, %v4883_v35 }
 0x595   :  { %v3335_v30 = vsel %vm480_vm3, %v3330_v36, %v3334_v29 }
 0x596   :  { %v3336_v32 = vpack.c.bf16 %v3335_v30, %v3335_v30 }
 0x598   :  { %4251 = vmatmul.mubr.msk.bf16.vlgmr.msra.gmra.mrb[28].mxu0 %vm3385_vm5, %v3336_v32  ;;  %4252 = vmatmul.mubr.msk.bf16.vlgmr.msra.gmra.mrb[28].mxu1 %vm3385_vm5, %v3336_v32 }
 0x599   :  { %4375 = vmatpush3.bf16.msra.mxu0 %v4539_v31  ;;  %4397 = vmatpush3.bf16.msra.mxu1 %v4540_v38 }
 0x59a   :  { %4376 = vmatprep.subr.bf16.mxu0 %v4541_v33  ;;  %4398 = vmatprep.subr.bf16.mxu1 %v4542_v40 }
 0x59d   :  { %4377 = vmatpush3.bf16.msra.mxu0 %v4543_v27  ;;  %4399 = vmatpush3.bf16.msra.mxu1 %v4544_v34 }
 0x59e   :  { %4378 = vmatprep.subr.bf16.mxu0 %v4545_v37  ;;  %4400 = vmatprep.subr.bf16.mxu1 %v4546_v41 }
 0x5a1   :  { %4379 = vmatpush3.bf16.msra.mxu0 %v4547_v44  ;;  %4401 = vmatpush3.bf16.msra.mxu1 %v4548_v45 }
 0x5a2   :  { %4380 = vmatprep.subr.bf16.mxu0 %v4549_v43  ;;  %4402 = vmatprep.subr.bf16.mxu1 %v4550_v46 }
 0x5a5   :  { %4381 = vmatpush3.bf16.msra.mxu0 %v4551_v48  ;;  %4403 = vmatpush3.bf16.msra.mxu1 %v4552_v49 }
 0x5a6   :  { %4382 = vmatprep.subr.bf16.mxu0 %v4553_v5  ;;  %4404 = vmatprep.subr.bf16.mxu1 %v4554_v52 }
 0x5a9   :  { %4383 = vmatpush3.bf16.msra.mxu0 %v4555_v56  ;;  %4405 = vmatpush3.bf16.msra.mxu1 %v4556_v19 }
 0x5aa   :  { %4384 = vmatprep.subr.bf16.mxu0 %v4557_v53  ;;  %4406 = vmatprep.subr.bf16.mxu1 %v4558_v54 }
 0x5ad   :  { %4385 = vmatpush3.bf16.msra.mxu0 %v4559_v55  ;;  %4407 = vmatpush3.bf16.msra.mxu1 %v4560_v50 }
 0x5ae   :  { %4386 = vmatprep.subr.bf16.mxu0 %v4561_v57  ;;  %4408 = vmatprep.subr.bf16.mxu1 %v4562_v58 }
 0x5b1   :  { %4387 = vmatpush3.bf16.msra.mxu0 %v4563_v59  ;;  %4409 = vmatpush3.bf16.msra.mxu1 %v4564_v60 }
 0x5b2   :  { %4388 = vmatprep.subr.bf16.mxu0 %v4565_v61  ;;  %4410 = vmatprep.subr.bf16.mxu1 %v4566_v62 }
 0x5b5   :  { %4389 = vmatpush3.bf16.msra.mxu0 %v4567_v63  ;;  %4411 = vmatpush3.bf16.msra.mxu1 %v4568_v0 }
 0x66b   :  { %v3423_v2 = vpop.f32.mrb[28].mxu0  ;;  %v3464_v3 = vpop.f32.mrb[28].mxu1 }
 0x66c   :  { %v3474_v4 = vrot.slane %v3423_v2, %v4883_v35  ;;  %v3482_v7 = vrot.slane %v3464_v3, %v4883_v35  ;;  %v3425_v8 = vpop.f32.mrb[29].mxu0  ;;  %v3466_v9 = vpop.f32.mrb[29].mxu1  ;;  %v3494_v10 = vrot.slane %v3423_v2, %v4891_v39  ;;  %v3502_v1 = vrot.slane %v3464_v3, %v4891_v39 }
 0x66d   :  { %v3478_v11 = vrot.slane %v3425_v8, %v4883_v35  ;;  %v3486_v12 = vrot.slane %v3466_v9, %v4883_v35  ;;  %v3427_v13 = vpop.f32.mrb[30].mxu0  ;;  %v3468_v15 = vpop.f32.mrb[30].mxu1  ;;  %v3498_v21 = vrot.slane %v3425_v8, %v4891_v39  ;;  %v3506_v35 = vrot.slane %v3466_v9, %v4891_v39 }
 0x66e   :  { %v3487_v6 = vmul.f32 %v3474_v4, %v5131_v42  ;;  %v3489_v16 = vmul.f32 %v3482_v7, %v5133_v14  ;;  %v3428_v17 = vpop.f32.mrb[31].mxu0  ;;  %v3469_v18 = vpop.f32.mrb[31].mxu1 }
 0x66f   :  { %v3488_v20 = vmul.f32 %v3478_v11, %v5135_v47  ;;  %v3490_v22 = vmul.f32 %v3486_v12, %v5141_v51  ;;  %v4253_v51 = vld [vmem:[%s5333_s10] ss:$0 sm:$0xff]  ;;  %s4629_s10 = smov [#allocation5]  }
 0x670   :  { %v3507_v23 = vadd.f32 %v3494_v10, %v3487_v6  ;;  %v3509_v24 = vadd.f32 %v3502_v1, %v3489_v16  ;;  %s3880_s28 = sshll.u32 %s4629_s10, 4  ;;  %s3881_s28 = int_to_ptr.vmem [resolvable:$true] %s3880_s28 }
 0x671   :  { %v3508_v25 = vadd.f32 %v3498_v21, %v3488_v20  ;;  %v3510_v42 = vadd.f32 %v3506_v35, %v3490_v22  ;;  %s4599_s29 = scalar_lea.vmem %s3881_s28, 32  ;;  %p4604_p9 = scmp.lt.s32.totalorder %s3881_s28, %s3881_s28 }
 0x672   :  { %v3511_v29 = vpack.c.bf16 %v3507_v23, %v3507_v23  ;;  %v3513_v14 = vpack.c.bf16 %v3509_v24, %v3509_v24  ;;  %p4600_p8 = scmp.ne.s32.totalorder %s3881_s28, %s4599_s29  ;;  %p4605_p10 = scmp.lt.s32.totalorder %s4599_s29, %s4599_s29 }
 0x673   :  { %v3512_v26 = vpack.c.bf16 %v3508_v25, %v3508_v25  ;;  %v3514_v28 = vpack.c.bf16 %v3510_v42, %v3510_v42 }
 0x674   :  { %p4606_p11 = por %p4605_p10, %p4604_p9 }
 0x675   :  { %3810 = vmatprep.mubr.bf16.mxu0 %v3512_v26  ;;  %3850 = vmatprep.mubr.bf16.mxu1 %v3514_v28 }
 0x676   :  { %3811 = vmatmul.mubr.bf16.vlgmr.msra.gmra.mrb[32].mxu0 %v3511_v29  ;;  %3851 = vmatmul.mubr.bf16.vlgmr.msra.gmra.mrb[32].mxu1 %v3513_v14  ;;  %p4607_p12 = pnand %p4606_p11, %p4600_p8 }
 0x749   :  { %v4390_v36 = vpop.f32.mrb[32].mxu0  ;;  %v4412_v47 = vpop.f32.mrb[32].mxu1 }
 0x74a   :  { %v4391_v30 = vpop.f32.mrb[33].mxu0  ;;  %v4413_v39 = vpop.f32.mrb[33].mxu1 }
 0x74b   :  { %v4392_v31 = vadd.f32 %v4391_v30, %v4390_v36  ;;  %v4414_v38 = vadd.f32 %v4413_v39, %v4412_v47  ;;  %v4393_v32 = vpop.f32.mrb[34].mxu0  ;;  %v4415_v33 = vpop.f32.mrb[34].mxu1 }
 0x74c   :  { %v4394_v40 = vpop.f32.mrb[35].mxu0  ;;  %v4416_v27 = vpop.f32.mrb[35].mxu1 }
 0x74d   :  { %v3813_v34 = vadd.f32 %v4392_v31, %v4253_v51 }
 0x74f   :  { %v3853_v37 = vadd.f32 %v4414_v38, %v3813_v34 }
 0x751   :  { %vm3858_vm6 = vcmp.gt.f32.partialorder %v3853_v37, 0.0  ;;  %v3859_v41 = vmul.f32 0.01, %v3853_v37 }
 0x753   :  { %v3860_v44 = vsel %vm3858_vm6, %v3853_v37, %v3859_v41 }
 0x754   :  { %v3862_v45 = vsel %vm3861_vm7, %v3860_v44, -inf }
 0x755   :  { %3863 = vmax.xlane.f32.xlu0 %v3862_v45 }
 0x7e2   :  { %v3864_v43 = vpop.xlane.xlu0 %3863 }
 0x7e3   :  { %v3865_v46 = vsub.f32 %v3860_v44, %v3864_v43 }
 0x7e5   :  { %v3866_v48 = vmul.f32 1.442695, %v3865_v46 }
 0x7e7   :  { %4573 = vpow2.f32 %v3866_v48 }
 0x7f1   :  { %v4574_v49 = vpop.eup %4573 }
 0x7f2   :  { %v3868_v5 = vsel %vm3861_vm7, %v4574_v49, 0.0 }
 0x7f3   :  { %3869 = vadd.xlane.f32.xlu0 %v3868_v5 }
 0x880   :  { %v3870_v52 = vpop.xlane.xlu0 %3869 }
 0x881   :  { %4575 = vrcp.f32 %v3870_v52 }
 0x88b   :  { %v4576_v56 = vpop.eup %4575 }
 0x88c   :  { %v3872_v19 = vmul.f32 %v4576_v56, %v4574_v49 }
 0x88e   :  { %3873 = vst.msk [vmem:[#allocation5] sm:$0x3] %vm3861_vm7, %v3872_v19 }
 0x88f   :  { %4610 = shalt.err (!%p4607_p12)
}
 0x890   :  { %s4611_s7 = scalar_lea.hbm %s5334_s11, 32 }
 0x891   :  { %p4612_p13 = scmp.ne.s32.totalorder %s5334_s11, %s4611_s7  ;;  %p4615_p0 = scmp.lt.u32.totalorder %s4611_s7, %s5334_s11 }
 0x893   :  { %p4617_p1 = pnand %p4615_p0, %p4612_p13 }
 0x895   :  { %4620 = shalt.err (!%p4617_p1)
}
 0x896   :  { %3883 = dma.vmem_to_hbm [thread:$0]  %s3881_s28, 32, %s5334_s11, [#allocation4]  }
 0x897   :  { %4623 = dma.done.wait [#allocation4], 32  }
 0x898   :  { %4624 = vsyncadd [#allocation4], 4294967264 }
 0x899   :  { %3887 = vsyncpa [#allocation3], 1 }
 0x89a   :  { %3888 = vsyncpa [#allocation4], 1 }

</bundles_post_ra>
